<compile_context>
chip_gen: v7x
topology: tpu7x:2x2x1
jax: 0.10.0
libtpu: 0.0.40
codegen_flags: <defaults>
</compile_context>

<pallas_src>
import numpy as np
import jax
import jax.numpy as jnp
from jax import lax
from jax.experimental import pallas as pl
from jax.experimental.pallas import tpu as pltpu

_VMEM_LIMIT = 48 * 1024 * 1024  # safe on v5e/v6e (128 MiB) and v7x (64 MiB)


# ----------------------------- Pallas kernels ------------------------------

def _mm_stats_kernel(a_ref, b_ref, y_ref, sum_ref, ssq_ref, acc_ref):
    """Tiled matmul: bf16 operands, f32 VMEM accumulator, bf16 output.
    Epilogue writes per-(M-block, N-block) partial column sum / sum-of-squares
    from the f32 accumulator (BN batch statistics), so no grid axis other than
    K carries state and both M and N axes can be megacore-parallel."""
    k = pl.program_id(2)
    nk = pl.num_programs(2)

    @pl.when(k == 0)
    def _():
        acc_ref[...] = jnp.zeros_like(acc_ref)

    # NOTE: accumulation must stay f32, so the acc scratch is kept even though
    # y_ref is resident across k (y is stored in bf16 to halve HBM traffic).
    acc_ref[...] += jnp.dot(a_ref[...], b_ref[...],
                            preferred_element_type=jnp.float32)

    @pl.when(k == nk - 1)
    def _():
        acc = acc_ref[...]                              # f32 (tm, tn)
        y_ref[...] = acc.astype(y_ref.dtype)            # bf16 store
        s = jnp.sum(acc, axis=0, keepdims=True)         # (1, tn)
        q = jnp.sum(acc * acc, axis=0, keepdims=True)   # (1, tn)
        sum_ref[...] = s[None]                          # (1, 1, tn)
        ssq_ref[...] = q[None]


def _bn_leaky_kernel(y_ref, scale_ref, bias_ref, o_ref):
    # bf16 I/O, f32 math (v5e has no bf16 VPU path).
    z = y_ref[...].astype(jnp.float32) * scale_ref[...] + bias_ref[...]
    o_ref[...] = jnp.where(z > 0, z, 0.1 * z).astype(o_ref.dtype)


def _bn_leaky_res_kernel(y_ref, scale_ref, bias_ref, r_ref, o_ref):
    z = y_ref[...].astype(jnp.float32) * scale_ref[...] + bias_ref[...]
    z = jnp.where(z > 0, z, 0.1 * z)
    o_ref[...] = (z + r_ref[...].astype(jnp.float32)).astype(o_ref.dtype)


# --------------------------- tiling helpers ---------------------------------

def _round_up(x, m):
    return (x + m - 1) // m * m


def _pick_tm(M):
    """Row tile: prefer a divisor of M (avoids a padded copy of the patch
    matrix); only pad up to the next multiple of 8 for tiny M."""
    Mp = _round_up(M, 8)
    if Mp <= 1024:
        return Mp, Mp                      # single full-extent block
    for cand in (1024, 512, 256, 128):
        if Mp % cand == 0:
            return cand, Mp
    return 512, _round_up(Mp, 512)


def _pick_tk(K):
    """Contraction tile: small K stays one full-extent block; large K uses a
    lane-aligned chunk that divides the (rarely padded) extent."""
    if K <= 1024:
        return K, K
    Kp = _round_up(K, 128)
    for cand in (512, 384, 256, 128):
        if Kp % cand == 0:
            return cand, Kp
    return 128, Kp


def _pick_tn(Np):
    """Np is always a multiple of 128 (weights pre-padded), so outputs are
    lane-dense; use 512-wide strips for the weight-streaming-bound deep
    layers."""
    for cand in (512, 256, 128):
        if Np % cand == 0:
            return cand
    return Np


def _pick_rows(Mp, cap=512):
    if Mp <= cap:
        return Mp
    for cand in (512, 256, 128, 64, 32, 16, 8):
        if Mp % cand == 0:
            return cand
    return Mp


# --------------------------- Pallas call wrappers ---------------------------

def pallas_conv_matmul(a, b, tm, tk, tn):
    """a: (Mp, Kp) bf16, b: (Kp, Np) bf16 ->
       y (Mp, Np) bf16, psum (ni, 1, Np) f32, pssq (ni, 1, Np) f32."""
    Mp, Kp = a.shape
    _, Np = b.shape
    ni, nj, nk = Mp // tm, Np // tn, Kp // tk
    grid = (nj, ni, nk)   # K innermost: y / stats blocks resident across K
    return pl.pallas_call(
        _mm_stats_kernel,
        out_shape=(jax.ShapeDtypeStruct((Mp, Np), jnp.bfloat16),
                   jax.ShapeDtypeStruct((ni, 1, Np), jnp.float32),
                   jax.ShapeDtypeStruct((ni, 1, Np), jnp.float32)),
        grid_spec=pltpu.PrefetchScalarGridSpec(
            num_scalar_prefetch=0,
            grid=grid,
            in_specs=[pl.BlockSpec((tm, tk), lambda j, i, k: (i, k)),
                      pl.BlockSpec((tk, tn), lambda j, i, k: (k, j))],
            out_specs=(pl.BlockSpec((tm, tn), lambda j, i, k: (i, j)),
                       pl.BlockSpec((1, 1, tn), lambda j, i, k: (i, 0, j)),
                       pl.BlockSpec((1, 1, tn), lambda j, i, k: (i, 0, j))),
            scratch_shapes=[pltpu.VMEM((tm, tn), jnp.float32)]),
        compiler_params=pltpu.CompilerParams(
            dimension_semantics=("parallel", "parallel", "arbitrary"),
            vmem_limit_bytes=_VMEM_LIMIT),
    )(a, b)


def pallas_bn_leaky(y, scale, bias, residual=None):
    """Tiled, pipelined BN-apply + LeakyReLU (+ residual). y/residual/output
    are bf16 (halves streaming HBM traffic); scale/bias f32, math in f32."""
    Mp, Np = y.shape
    tmb = _pick_rows(Mp)
    grid = (Mp // tmb,)
    row = pl.BlockSpec((tmb, Np), lambda i: (i, 0))
    vec = pl.BlockSpec((1, Np), lambda i: (0, 0))
    cp = pltpu.CompilerParams(dimension_semantics=("parallel",),
                              vmem_limit_bytes=_VMEM_LIMIT)
    out_shape = jax.ShapeDtypeStruct((Mp, Np), jnp.bfloat16)
    if residual is None:
        return pl.pallas_call(
            _bn_leaky_kernel, out_shape=out_shape, grid=grid,
            in_specs=[row, vec, vec], out_specs=row, compiler_params=cp,
        )(y, scale, bias)
    return pl.pallas_call(
        _bn_leaky_res_kernel, out_shape=out_shape, grid=grid,
        in_specs=[row, vec, vec, row], out_specs=row, compiler_params=cp,
    )(y, scale, bias, residual)


# ------------------------------- JAX glue -----------------------------------

def im2col(x, kh, kw, stride, pad):
    """x: [N, H, W, C] bf16 -> patches [N*Ho*Wo, kh*kw*C] bf16."""
    # TODO(synk): im2col still materializes a kh*kw-times expanded copy of the
    # activation in HBM (now bf16); a tap-indexed A BlockSpec or manual
    # shifted-slice DMA inside the matmul kernel would remove that read
    # amplification entirely for the 3x3 convs.
    N, H, W, C = x.shape
    Ho = (H + 2 * pad - kh) // stride + 1
    Wo = (W + 2 * pad - kw) // stride + 1
    xp = jnp.pad(x, ((0, 0), (pad, pad), (pad, pad), (0, 0)))
    cols = []
    for i in range(kh):
        for j in range(kw):
            cols.append(xp[:, i:i + stride * Ho:stride,
                           j:j + stride * Wo:stride, :])
    p = jnp.stack(cols, axis=3)              # [N, Ho, Wo, kh*kw, C]
    return p.reshape(N * Ho * Wo, kh * kw * C), (N, Ho, Wo)


def conv_bn_leaky(x, params, stride, pad, residual=None):
    kh, kw = params["ksize"]
    cout = params["cout"]
    patches, (N, Ho, Wo) = im2col(x, kh, kw, stride, pad)   # bf16 [M, K]
    M, K = patches.shape
    w = params["w"]                                         # bf16 [K, Np]
    Np = w.shape[1]

    tm, Mp = _pick_tm(M)
    tk, Kp = _pick_tk(K)
    tn = _pick_tn(Np)

    a = patches
    if (Mp, Kp) != (M, K):
        a = jnp.pad(a, ((0, Mp - M), (0, Kp - K)))   # zero rows/cols: no effect
    if Kp != K:
        w = jnp.pad(w, ((0, Kp - K), (0, 0)))

    y, psum, pssq = pallas_conv_matmul(a, w, tm, tk, tn)

    inv_m = 1.0 / float(M)                 # true row count (padded rows are 0)
    csum = jnp.sum(psum, axis=(0, 1))      # combine per-M-block partials
    cssq = jnp.sum(pssq, axis=(0, 1))
    mean = csum * inv_m
    # TODO(synk): E[x^2]-E[x]^2 can cancel when |mean| >> std; a Welford-style
    # per-block combine would track PyTorch's training-mode variance tighter.
    var = jnp.maximum(cssq * inv_m - mean * mean, 0.0)
    scale = params["gamma"] * lax.rsqrt(var + 1e-5)
    bias = params["beta"] - mean * scale

    r = None
    if residual is not None:
        r = residual.reshape(M, cout).astype(jnp.bfloat16)
        if (Mp, Np) != (M, cout):
            r = jnp.pad(r, ((0, Mp - M), (0, Np - cout)))

    out = pallas_bn_leaky(y, scale[None, :], bias[None, :], r)
    return out[:M, :cout].reshape(N, Ho, Wo, cout)


# ----------------------------- parameter init -------------------------------

def make_conv_params(key, kh, kw, cin, cout):
    w = jax.random.normal(key, (kh, kw, cin, cout), jnp.float32)
    w = (w / np.sqrt(kh * kw * cin)).reshape(kh * kw * cin, cout)
    cpad = _round_up(cout, 128)            # lane-dense output channels
    if cpad != cout:
        w = jnp.pad(w, ((0, 0), (0, cpad - cout)))
    gamma = jnp.pad(jnp.ones((cout,), jnp.float32), (0, cpad - cout))
    beta = jnp.zeros((cpad,), jnp.float32)
    return {"w": w.astype(jnp.bfloat16),   # pre-cast: matmul streams bf16
            "gamma": gamma,                # BN weight (default 1; pad cols 0)
            "beta": beta,                  # BN bias   (default 0)
            "cout": cout, "ksize": (kh, kw)}


def init_darknet53(key):
    keys = iter(jax.random.split(key, 64))
    params = {"stem": make_conv_params(next(keys), 3, 3, 3, 32)}
    cfg = [("layer1", 32, 64, 1), ("layer2", 64, 128, 2),
           ("layer3", 128, 256, 8), ("layer4", 256, 512, 8),
           ("layer5", 512, 1024, 4)]
    for name, cin, cout, nblocks in cfg:
        layer = {"down": make_conv_params(next(keys), 3, 3, cin, cout),
                 "blocks": []}
        for _ in range(nblocks):
            half = cout // 2
            layer["blocks"].append({
                "c1": make_conv_params(next(keys), 1, 1, cout, half),
                "c2": make_conv_params(next(keys), 3, 3, half, cout)})
        params[name] = layer
    return params


# ------------------------------ forward pass --------------------------------

def darknet53_forward(params, x_nchw):
    # bf16 activations end-to-end; f32 only inside kernels / BN statistics.
    x = jnp.transpose(x_nchw, (0, 2, 3, 1)).astype(jnp.bfloat16)  # NCHW->NHWC
    x = conv_bn_leaky(x, params["stem"], stride=1, pad=1)

    def run_layer(x, layer):
        x = conv_bn_leaky(x, layer["down"], stride=2, pad=1)
        for blk in layer["blocks"]:
            r = x
            h = conv_bn_leaky(x, blk["c1"], stride=1, pad=0)              # 1x1
            x = conv_bn_leaky(h, blk["c2"], stride=1, pad=1, residual=r)  # 3x3+res
        return x

    x = run_layer(x, params["layer1"])
    x = run_layer(x, params["layer2"])
    route1 = run_layer(x, params["layer3"])
    route2 = run_layer(route1, params["layer4"])
    x = run_layer(route2, params["layer5"])
    nchw = lambda t: jnp.transpose(t, (0, 3, 1, 2)).astype(jnp.float32)
    return nchw(route1), nchw(route2), nchw(x)


if __name__ == "__main__":
    key = jax.random.PRNGKey(0)
    pkey, xkey = jax.random.split(key)
    params = init_darknet53(pkey)

    # small NCHW input, matching the PyTorch module's interface
    x = jax.random.normal(xkey, (2, 3, 32, 32), jnp.float32)

    route1, route2, out = darknet53_forward(params, x)
    jax.block_until_ready((route1, route2, out))

    assert route1.shape == (2, 256, 4, 4)
    assert route2.shape == (2, 512, 2, 2)
    assert out.shape == (2, 1024, 1, 1)
    assert np.all(np.isfinite(np.asarray(route1)))
    assert np.all(np.isfinite(np.asarray(route2)))
    assert np.all(np.isfinite(np.asarray(out)))
    print("KERNEL_OK")
</pallas_src>

<mosaic_0001>
module attributes {stable_mosaic.version = 11 : i64} {
  func.func @_mm_stats_kernel(%arg0: i32, %arg1: i32, %arg2: i32, %arg3: memref<1024x27xbf16, #tpu.memory_space<vmem>>, %arg4: memref<27x128xbf16, #tpu.memory_space<vmem>>, %arg5: memref<1024x128xbf16, #tpu.memory_space<vmem>>, %arg6: memref<1x1x128xf32, #tpu.memory_space<vmem>>, %arg7: memref<1x1x128xf32, #tpu.memory_space<vmem>>, %arg8: memref<1024x128xf32, #tpu.memory_space<vmem>>) attributes {dimension_semantics = [#tpu.dimension_semantics<parallel>, #tpu.dimension_semantics<parallel>, #tpu.dimension_semantics<arbitrary>], iteration_bounds = array<i64: 1, 2, 1>, scalar_prefetch = 0 : i64, scratch_operands = 1 : i64, tpu.core_type = #tpu.core_type<tc>, window_params = [{transform_indices = @transform_0, window_bounds = array<i64: 1024, 27>}, {transform_indices = @transform_1, window_bounds = array<i64: 27, 128>}, {transform_indices = @transform_2, window_bounds = array<i64: 1024, 128>}, {transform_indices = @transform_3, window_bounds = array<i64: 1, 1, 128>}, {transform_indices = @transform_4, window_bounds = array<i64: 1, 1, 128>}]} {
    %c0_i32 = arith.constant 0 : i32
    %0 = arith.cmpi eq, %arg2, %c0_i32 : i32
    %1 = arith.extui %0 : i1 to i32
    %c0_i32_0 = arith.constant 0 : i32
    %2 = arith.cmpi ne, %1, %c0_i32_0 : i32
    scf.if %2 {
      %cst_10 = arith.constant 0.000000e+00 : f32
      %12 = vector.broadcast %cst_10 : f32 to vector<1024x128xf32>
      %c0_11 = arith.constant 0 : index
      %c0_12 = arith.constant 0 : index
      %13 = vector.load %arg8[%c0_11, %c0_12] : memref<1024x128xf32, #tpu.memory_space<vmem>>, vector<1024x128xf32>
      tpu.vector_store %arg8[%c0_11, %c0_12], %12 {strides = array<i32>} : memref<1024x128xf32, #tpu.memory_space<vmem>>, vector<1024x128xf32>,
    } else {
    }
    %c0 = arith.constant 0 : index
    %c0_1 = arith.constant 0 : index
    %3 = vector.load %arg8[%c0, %c0_1] : memref<1024x128xf32, #tpu.memory_space<vmem>>, vector<1024x128xf32>
    %c0_2 = arith.constant 0 : index
    %c0_3 = arith.constant 0 : index
    %4 = vector.load %arg3[%c0_2, %c0_3] : memref<1024x27xbf16, #tpu.memory_space<vmem>>, vector<1024x27xbf16>
    %c0_4 = arith.constant 0 : index
    %c0_5 = arith.constant 0 : index
    %5 = vector.load %arg4[%c0_4, %c0_5] : memref<27x128xbf16, #tpu.memory_space<vmem>>, vector<27x128xbf16>
    %cst = arith.constant dense<0.000000e+00> : vector<1024x128xf32>
    %6 = tpu.matmul %4, %5, %cst {dimension_numbers = #tpu.dot_dimension_numbers<[1], [0], [0], [1], [0, 0, 1, 1], [], []>} : vector<1024x27xbf16>, vector<27x128xbf16>, vector<1024x128xf32> -> vector<1024x128xf32>
    %7 = arith.addf %3, %6 : vector<1024x128xf32>
    %c0_6 = arith.constant 0 : index
    %c0_7 = arith.constant 0 : index
    %8 = vector.load %arg8[%c0_6, %c0_7] : memref<1024x128xf32, #tpu.memory_space<vmem>>, vector<1024x128xf32>
    tpu.vector_store %arg8[%c0_6, %c0_7], %7 {strides = array<i32>} : memref<1024x128xf32, #tpu.memory_space<vmem>>, vector<1024x128xf32>,
    %c0_i32_8 = arith.constant 0 : i32
    %9 = arith.cmpi eq, %arg2, %c0_i32_8 : i32
    %10 = arith.extui %9 : i1 to i32
    %c0_i32_9 = arith.constant 0 : i32
    %11 = arith.cmpi ne, %10, %c0_i32_9 : i32
    scf.if %11 {
      %c0_10 = arith.constant 0 : index
      %c0_11 = arith.constant 0 : index
      %12 = vector.load %arg8[%c0_10, %c0_11] : memref<1024x128xf32, #tpu.memory_space<vmem>>, vector<1024x128xf32>
      %13 = arith.truncf %12 : vector<1024x128xf32> to vector<1024x128xbf16>
      %c0_12 = arith.constant 0 : index
      %c0_13 = arith.constant 0 : index
      %14 = vector.load %arg5[%c0_12, %c0_13] : memref<1024x128xbf16, #tpu.memory_space<vmem>>, vector<1024x128xbf16>
      tpu.vector_store %arg5[%c0_12, %c0_13], %13 {strides = array<i32>} : memref<1024x128xbf16, #tpu.memory_space<vmem>>, vector<1024x128xbf16>,
      %cst_14 = arith.constant dense<0.000000e+00> : vector<128xf32>
      %15 = vector.multi_reduction <add>, %12, %cst_14 [0] : vector<1024x128xf32> to vector<128xf32>
      %16 = vector.shape_cast %15 : vector<128xf32> to vector<1x128xf32>
      %17 = arith.mulf %12, %12 : vector<1024x128xf32>
      %cst_15 = arith.constant dense<0.000000e+00> : vector<128xf32>
      %18 = vector.multi_reduction <add>, %17, %cst_15 [0] : vector<1024x128xf32> to vector<128xf32>
      %19 = vector.shape_cast %18 : vector<128xf32> to vector<1x128xf32>
      %20 = vector.shape_cast %16 : vector<1x128xf32> to vector<1x1x128xf32>
      %c0_16 = arith.constant 0 : index
      %c0_17 = arith.constant 0 : index
      %c0_18 = arith.constant 0 : index
      %21 = vector.load %arg6[%c0_16, %c0_17, %c0_18] : memref<1x1x128xf32, #tpu.memory_space<vmem>>, vector<1x1x128xf32>
      tpu.vector_store %arg6[%c0_16, %c0_17, %c0_18], %20 {strides = array<i32>} : memref<1x1x128xf32, #tpu.memory_space<vmem>>, vector<1x1x128xf32>,
      %22 = vector.shape_cast %19 : vector<1x128xf32> to vector<1x1x128xf32>
      %c0_19 = arith.constant 0 : index
      %c0_20 = arith.constant 0 : index
      %c0_21 = arith.constant 0 : index
      %23 = vector.load %arg7[%c0_19, %c0_20, %c0_21] : memref<1x1x128xf32, #tpu.memory_space<vmem>>, vector<1x1x128xf32>
      tpu.vector_store %arg7[%c0_19, %c0_20, %c0_21], %22 {strides = array<i32>} : memref<1x1x128xf32, #tpu.memory_space<vmem>>, vector<1x1x128xf32>,
    } else {
    }
    return
  }
  func.func @transform_0(%arg0: i32, %arg1: i32, %arg2: i32) -> (i32, i32) {
    %c0_i32 = arith.constant 0 : i32
    return %arg1, %arg2 : i32, i32
  }
  func.func @transform_1(%arg0: i32, %arg1: i32, %arg2: i32) -> (i32, i32) {
    %c0_i32 = arith.constant 0 : i32
    return %arg2, %arg0 : i32, i32
  }
  func.func @transform_2(%arg0: i32, %arg1: i32, %arg2: i32) -> (i32, i32) {
    %c0_i32 = arith.constant 0 : i32
    return %arg1, %arg0 : i32, i32
  }
  func.func @transform_3(%arg0: i32, %arg1: i32, %arg2: i32) -> (i32, i32, i32) {
    %c0_i32 = arith.constant 0 : i32
    %c0_i32_0 = arith.constant 0 : i32
    return %arg1, %c0_i32, %arg0 : i32, i32, i32
  }
  func.func @transform_4(%arg0: i32, %arg1: i32, %arg2: i32) -> (i32, i32, i32) {
    %c0_i32 = arith.constant 0 : i32
    %c0_i32_0 = arith.constant 0 : i32
    return %arg1, %c0_i32, %arg0 : i32, i32, i32
  }
}

</mosaic_0001>

<bundles_post_ra>
// kernel: tpu_custom_call.1
= control target key start
LH: loop header
LB: loop body
LE: loop exit
PB: predicated region body
PF: predicated region fallthrough
CT: control target
= control target key end

     0   :  { %10 = vsyncpa [#allocation4], 0  ;;  %s5453_s0 = inlined_call_operand.vmem [shape: bf16[2048,27], index: 0, kind: input, shape index: {}]   ;;  %s5454_s1 = inlined_call_operand.vmem [shape: bf16[27,128], index: 1, kind: input, shape index: {}]   ;;  %s5455_s2 = inlined_call_operand.hbm [shape: bf16[2048,128], index: 2, kind: output, shape index: {0}]   ;;  %s5456_s3 = inlined_call_operand.hbm [shape: f32[2,1,128], index: 3, kind: output, shape index: {1}]   ;;  %s5457_s4 = inlined_call_operand.hbm [shape: f32[2,1,128], index: 4, kind: output, shape index: {2}]  }
   0x1   :  { %12 = vsyncpa [#allocation4 + $0x1], 0 }
   0x2   :  { %13 = vsyncpa [#allocation6], 0 }
   0x3   :  { %15 = vsyncpa [#allocation6 + $0x1], 0  ;;  %s4671_s15 = smov 0   ;;  %s4673_s16 = smov 0  }
   0x4   :  { %s4675_s17 = smov 0   ;;  %s4677_s18 = smov 0  }
   0x5   :  { %s4679_s19 = smov 0   ;;  %s4681_s20 = smov 0  }
   0x6 LB: > { %s3378_s21 = sadd.s32 4294967295, %s4638_s20   ;;  %s3379_s22 = sadd.s32 4294967294, %s4638_s20   ;;  %s4638_s20 = sphi %s4681_s20, %s21_s20   ;;  %s4634_s19 = sphi %s4679_s19, %s5480_s19   ;;  %s4630_s18 = sphi %s4677_s18, %s5479_s18   ;;  %s4626_s17 = sphi %s4675_s17, %s5478_s17   ;;  %s4622_s16 = sphi %s4673_s16, %s5477_s16   ;;  %s4618_s15 = sphi %s4671_s15, %s5476_s15  }
   0x7   : > { %s36_s23 = sadd.s32 1, %s4634_s19  ;;  %s105_s24 = sadd.s32 1, %s4626_s17 }
   0x8   : > { %p38_p0 = scmp.ge.s32.totalorder %s36_s23, 2  ;;  %p115_p1 = scmp.ne.s32.totalorder %s4626_s17, %s4622_s16 }
   0x9   : > { %p116_p2 = scmp.eq.s32.totalorder %s3378_s21, 1  ;;  %p121_p3 = scmp.ne.s32.totalorder %s4622_s16, %s4618_s15 }
   0xa   : > { %s5482_s23 = smov (%p38_p0, %s36_s23), 0  ;;  %p122_p5 = scmp.eq.s32.totalorder %s3379_s22, 1 }
   0xb   : > { %p4713_p4 = por %p116_p2, %p115_p1  ;;  %s100_s26 = ssub.s32 %s4634_s19, %s5482_s23 }
   0xc   : > { %p3383_p6 = scmp.ge.s32.totalorder %s4638_s20, 1  ;;  %p103_p7 = scmp.eq.s32.totalorder %s100_s26, 0 }
   0xd   : > { %p4722_p8 = por %p122_p5, %p121_p3  ;;  %p220_p9 = scmp.lt.s32.totalorder %s4638_s20, 3 }
   0xe   : > { %s4728_s28 = scalar_select %p103_p7, %s4626_s17, %s105_s24  }
   0xf   : > { %p221_p10 = pnand %p3383_p6, %p220_p9 }
  0x11   : > { %224 = sbr.rel (%p221_p10) target bundleno = 562 (0x232), region = 28 }
  0x18   : > { %v4434_v0 = vld [vmem:[%s5454_s1] sm:$0xff]   ;;  %vm1201_vm0 = vcmask 1044480   ;;  %v4435_v1 = vld [vmem:[%s5454_s1 + $0x8] sm:$0x3f]   ;;  %vm1202_vm1 = vcmask 1045504   ;;  %s3385_s7 = sshll.u32 %s4630_s18, 7 }
  0x19   : > { %4230 = vmatprep.subr.bf16.mxu0 %v4434_v0  ;;  %4362 = vmatprep.subr.bf16.mxu1 %v4434_v0  ;;  %v4640_v2 = vmov 65535   ;;  %p266_p11 = scmp.lt.s32.totalorder %s3385_s7, 255  ;;  %vm1008_vm2 = vcmask 220160   ;;  %s4871_s12 = sand.u32 1, %s4622_s16  }
  0x1a   : > { %4231 = vmatpush3.bf16.msra.mxu0 %v4434_v0  ;;  %v1203_v3 = vsel %vm1201_vm0, 4294967295, %v4640_v2  ;;  %4364 = vmatpush3.bf16.msra.mxu1 %v4434_v0  ;;  %s3384_s13 = sshll.u32 %s4871_s12, 9  ;;  %s3780_s24 = sshll.u32 %s4630_s18, 13 }
  0x1b   : > { %v1204_v4 = vsel %vm1202_vm1, %v1203_v3, 0  ;;  %s5484_s7 = smov (!%p266_p11, %s3385_s7), 255  ;;  %s4874_s14 = scalar_lea.vmem [#allocation3], %s3384_s13 }
  0x1c   : > { %v1206_v5 = vand.u32 %v4435_v1, %v1204_v4  ;;  %s3386_s8 = sshll.u32 %s5484_s7, 2  ;;  %s3199_s26 = sshll.u32 %s4874_s14, 4  ;;  %s5174_s26 = int_to_ptr.vmem [resolvable:$true] %s3199_s26 }
  0x1d   : > { %s4740_s11 = scalar_lea.vmem %s5453_s0, %s3386_s8  ;;  %s5172_s5 = scalar_lea.hbm %s5455_s2, %s3780_s24 }
  0x1e   : > { %4232 = vmatprep.subr.bf16.mxu0 %v1206_v5  ;;  %4363 = vmatprep.subr.bf16.mxu1 %v1206_v5  ;;  %v4436_v6 = vld [vmem:[%s4740_s11] sm:$0xff]   ;;  %v4437_v7 = vld [vmem:[%s4740_s11 + $0x8] sm:$0xff]   ;;  %v4438_v8 = vld [vmem:[%s4740_s11 + $0x10] sm:$0xff]   ;;  %s3177_s6 = scalar_lea.sflag [#allocation4], %s4871_s12  ;;  %s4500_s7 = scalar_lea.vmem %s5174_s26, 8192 }
  0x1f   : > { %4233 = vmatpush3.bf16.msra.mxu0 %v1206_v5  ;;  %4365 = vmatpush3.bf16.msra.mxu1 %v1206_v5  ;;  %v4439_v9 = vld [vmem:[%s4740_s11 + $0x18] sm:$0xff]   ;;  %v4440_v10 = vld [vmem:[%s4740_s11 + $0x20] sm:$0xff]   ;;  %v4441_v11 = vld [vmem:[%s4740_s11 + $0x28] sm:$0xff]   ;;  %p4501_p12 = scmp.ne.s32.totalorder %s5174_s26, %s4500_s7  ;;  %s4641_s8 = smov [#allocation3]  }
  0x20   : > { %4234 = vmatprep.mubr.msk.bf16.mxu0 %vm1008_vm2, %v4436_v6  ;;  %v4442_v12 = vld [vmem:[%s4740_s11 + $0x30] sm:$0xff]   ;;  %v4443_v13 = vld [vmem:[%s4740_s11 + $0x38] sm:$0xff]   ;;  %v4444_v14 = vld [vmem:[%s4740_s11 + $0x40] sm:$0xff]   ;;  %s4504_s9 = sshll.u32 %s4641_s8, 4  ;;  %s4505_s9 = int_to_ptr.vmem [resolvable:$false] %s4504_s9 }
  0x21   : > { %v4445_v15 = vld [vmem:[%s4740_s11 + $0x48] sm:$0xff]   ;;  %v4446_v16 = vld [vmem:[%s4740_s11 + $0x50] sm:$0xff]   ;;  %v4468_v17 = vld [vmem:[%s4740_s11 + $0x100] sm:$0xff]   ;;  %p4502_p13 = pnand %p4501_p12, %p4713_p4  ;;  %s4506_s10 = scalar_lea.vmem %s4505_s9, 16384 }
  0x22   : > { %4235 = vmatmul.mubr.msk.bf16.vlgmr.msra.gmra.mrb[0].mxu0 %vm1008_vm2, %v4437_v7  ;;  %v4469_v18 = vld [vmem:[%s4740_s11 + $0x108] sm:$0xff]   ;;  %4298 = vmatprep.mubr.msk.bf16.mxu1 %vm1008_vm2, %v4468_v17  ;;  %v4470_v19 = vld [vmem:[%s4740_s11 + $0x110] sm:$0xff]   ;;  %v4447_v20 = vld [vmem:[%s4740_s11 + $0x58] sm:$0xff]   ;;  %p4507_p1 = scmp.lt.s32.totalorder %s5174_s26, %s4505_s9  ;;  %p4508_p2 = scmp.lt.s32.totalorder %s4506_s10, %s4500_s7 }
  0x23   : > { %4238 = vmatprep.mubr.msk.bf16.mxu0 %vm1008_vm2, %v4438_v8  ;;  %4299 = vmatmul.mubr.msk.bf16.vlgmr.msra.gmra.mrb[0].mxu1 %vm1008_vm2, %v4469_v18  ;;  %v4448_v21 = vld [vmem:[%s4740_s11 + $0x60] sm:$0xff]   ;;  %v4471_v22 = vld [vmem:[%s4740_s11 + $0x118] sm:$0xff]   ;;  %v4449_v24 = vld [vmem:[%s4740_s11 + $0x68] sm:$0xff]   ;;  %p4503_p0 = pneg %p4502_p13 }
  0x24   : > { %4302 = vmatprep.mubr.msk.bf16.mxu1 %vm1008_vm2, %v4470_v19  ;;  %v4472_v23 = vld [vmem:[%s4740_s11 + $0x120] sm:$0xff]   ;;  %v4450_v25 = vld [vmem:[%s4740_s11 + $0x70] sm:$0xff]   ;;  %v4473_v26 = vld [vmem:[%s4740_s11 + $0x128] sm:$0xff]   ;;  %p4509_p3 = por %p4508_p2, %p4507_p1 }
  0x25   : > { %v4474_v27 = vld [vmem:[%s4740_s11 + $0x130] sm:$0xff]   ;;  %v4451_v28 = vld [vmem:[%s4740_s11 + $0x78] sm:$0xff]   ;;  %v4452_v30 = vld [vmem:[%s4740_s11 + $0x80] sm:$0xff]  }
  0x26   : > { %v4475_v29 = vld [vmem:[%s4740_s11 + $0x138] sm:$0xff]   ;;  %v4476_v31 = vld [vmem:[%s4740_s11 + $0x140] sm:$0xff]   ;;  %v4453_v32 = vld [vmem:[%s4740_s11 + $0x88] sm:$0xff]   ;;  %p4510_p5 = pnand %p4509_p3, %p4503_p0 }
  0x27   : > { %v4477_v33 = vld [vmem:[%s4740_s11 + $0x148] sm:$0xff]   ;;  %v4454_v34 = vld [vmem:[%s4740_s11 + $0x90] sm:$0xff]   ;;  %v4455_v36 = vld [vmem:[%s4740_s11 + $0x98] sm:$0xff]  }
  0x28   : > { %v4478_v35 = vld [vmem:[%s4740_s11 + $0x150] sm:$0xff]   ;;  %v4479_v37 = vld [vmem:[%s4740_s11 + $0x158] sm:$0xff]   ;;  %v4456_v38 = vld [vmem:[%s4740_s11 + $0xa0] sm:$0xff]  }
  0x29   : > { %v4480_v39 = vld [vmem:[%s4740_s11 + $0x160] sm:$0xff]   ;;  %v4457_v40 = vld [vmem:[%s4740_s11 + $0xa8] sm:$0xff]   ;;  %v4458_v42 = vld [vmem:[%s4740_s11 + $0xb0] sm:$0xff]  }
  0x2a   : > { %4239 = vmatmul.mubr.msk.bf16.gmra.mrb[4].mxu0 %vm1008_vm2, %v4439_v9  ;;  %v4481_v41 = vld [vmem:[%s4740_s11 + $0x168] sm:$0xff]   ;;  %v4482_v43 = vld [vmem:[%s4740_s11 + $0x170] sm:$0xff]   ;;  %v4459_v44 = vld [vmem:[%s4740_s11 + $0xb8] sm:$0xff]  }
  0x2b   : > { %4242 = vmatprep.mubr.msk.bf16.mxu0 %vm1008_vm2, %v4440_v10  ;;  %4303 = vmatmul.mubr.msk.bf16.gmra.mrb[4].mxu1 %vm1008_vm2, %v4471_v22  ;;  %v4483_v45 = vld [vmem:[%s4740_s11 + $0x178] sm:$0xff]   ;;  %v4460_v46 = vld [vmem:[%s4740_s11 + $0xc0] sm:$0xff]   ;;  %v4461_v48 = vld [vmem:[%s4740_s11 + $0xc8] sm:$0xff]  }
  0x2c   : > { %4306 = vmatprep.mubr.msk.bf16.mxu1 %vm1008_vm2, %v4472_v23  ;;  %v4484_v47 = vld [vmem:[%s4740_s11 + $0x180] sm:$0xff]   ;;  %v4485_v49 = vld [vmem:[%s4740_s11 + $0x188] sm:$0xff]   ;;  %v4462_v50 = vld [vmem:[%s4740_s11 + $0xd0] sm:$0xff]  }
  0x2d   : > { %v4486_v51 = vld [vmem:[%s4740_s11 + $0x190] sm:$0xff]   ;;  %v4463_v52 = vld [vmem:[%s4740_s11 + $0xd8] sm:$0xff]   ;;  %v4464_v54 = vld [vmem:[%s4740_s11 + $0xe0] sm:$0xff]  }
  0x2e   : > { %v4487_v53 = vld [vmem:[%s4740_s11 + $0x198] sm:$0xff]   ;;  %v4488_v55 = vld [vmem:[%s4740_s11 + $0x1a0] sm:$0xff]   ;;  %v4465_v56 = vld [vmem:[%s4740_s11 + $0xe8] sm:$0xff]  }
  0x2f   : > { %v4489_v57 = vld [vmem:[%s4740_s11 + $0x1a8] sm:$0xff]   ;;  %v4466_v58 = vld [vmem:[%s4740_s11 + $0xf0] sm:$0xff]   ;;  %v4467_v60 = vld [vmem:[%s4740_s11 + $0xf8] sm:$0xff]  }
  0x30   : > { %v4490_v59 = vld [vmem:[%s4740_s11 + $0x1b0] sm:$0xff]   ;;  %v4491_v61 = vld [vmem:[%s4740_s11 + $0x1b8] sm:$0xff]   ;;  %v4492_v62 = vld [vmem:[%s4740_s11 + $0x1c0] sm:$0xff]  }
  0x31   : > { %v4493_v63 = vld [vmem:[%s4740_s11 + $0x1c8] sm:$0xff]   ;;  %v4494_v0 = vld [vmem:[%s4740_s11 + $0x1d0] sm:$0xff]   ;;  %v4495_v1 = vld [vmem:[%s4740_s11 + $0x1d8] sm:$0xff]  }
  0x32   : > { %4243 = vmatmul.mubr.msk.bf16.gmra.mrb[8].mxu0 %vm1008_vm2, %v4441_v11  ;;  %v4496_v2 = vld [vmem:[%s4740_s11 + $0x1e0] sm:$0xff]   ;;  %v4497_v3 = vld [vmem:[%s4740_s11 + $0x1e8] sm:$0xff]   ;;  %v4498_v4 = vld [vmem:[%s4740_s11 + $0x1f0] sm:$0xff]  }
  0x33   : > { %4246 = vmatprep.mubr.msk.bf16.mxu0 %vm1008_vm2, %v4442_v12  ;;  %4307 = vmatmul.mubr.msk.bf16.gmra.mrb[8].mxu1 %vm1008_vm2, %v4473_v26  ;;  %v4499_v5 = vld [vmem:[%s4740_s11 + $0x1f8] sm:$0xff]  }
  0x34   : > { %4310 = vmatprep.mubr.msk.bf16.mxu1 %vm1008_vm2, %v4474_v27 }
  0x3a   : > { %4247 = vmatmul.mubr.msk.bf16.gmra.mrb[12].mxu0 %vm1008_vm2, %v4443_v13 }
  0x3b   : > { %4250 = vmatprep.mubr.msk.bf16.mxu0 %vm1008_vm2, %v4444_v14  ;;  %4311 = vmatmul.mubr.msk.bf16.gmra.mrb[12].mxu1 %vm1008_vm2, %v4475_v29 }
  0x3c   : > { %4314 = vmatprep.mubr.msk.bf16.mxu1 %vm1008_vm2, %v4476_v31 }
  0x42   : > { %4251 = vmatmul.mubr.msk.bf16.gmra.mrb[16].mxu0 %vm1008_vm2, %v4445_v15 }
  0x43   : > { %4254 = vmatprep.mubr.msk.bf16.mxu0 %vm1008_vm2, %v4446_v16  ;;  %4315 = vmatmul.mubr.msk.bf16.gmra.mrb[16].mxu1 %vm1008_vm2, %v4477_v33 }
  0x44   : > { %4318 = vmatprep.mubr.msk.bf16.mxu1 %vm1008_vm2, %v4478_v35 }
  0x4a   : > { %4255 = vmatmul.mubr.msk.bf16.gmra.mrb[20].mxu0 %vm1008_vm2, %v4447_v20 }
  0x4b   : > { %4258 = vmatprep.mubr.msk.bf16.mxu0 %vm1008_vm2, %v4448_v21  ;;  %4319 = vmatmul.mubr.msk.bf16.gmra.mrb[20].mxu1 %vm1008_vm2, %v4479_v37 }
  0x4c   : > { %4322 = vmatprep.mubr.msk.bf16.mxu1 %vm1008_vm2, %v4480_v39 }
  0x52   : > { %4259 = vmatmul.mubr.msk.bf16.gmra.mrb[24].mxu0 %vm1008_vm2, %v4449_v24 }
  0x53   : > { %4262 = vmatprep.mubr.msk.bf16.mxu0 %vm1008_vm2, %v4450_v25  ;;  %4323 = vmatmul.mubr.msk.bf16.gmra.mrb[24].mxu1 %vm1008_vm2, %v4481_v41 }
  0x54   : > { %4326 = vmatprep.mubr.msk.bf16.mxu1 %vm1008_vm2, %v4482_v43 }
  0x5a   : > { %4263 = vmatmul.mubr.msk.bf16.gmra.mrb[28].mxu0 %vm1008_vm2, %v4451_v28 }
  0x5b   : > { %4266 = vmatprep.mubr.msk.bf16.mxu0 %vm1008_vm2, %v4452_v30  ;;  %4327 = vmatmul.mubr.msk.bf16.gmra.mrb[28].mxu1 %vm1008_vm2, %v4483_v45 }
  0x5c   : > { %4330 = vmatprep.mubr.msk.bf16.mxu1 %vm1008_vm2, %v4484_v47 }
  0x62   : > { %4267 = vmatmul.mubr.msk.bf16.gmra.mrb[32].mxu0 %vm1008_vm2, %v4453_v32 }
  0x63   : > { %4270 = vmatprep.mubr.msk.bf16.mxu0 %vm1008_vm2, %v4454_v34  ;;  %4331 = vmatmul.mubr.msk.bf16.gmra.mrb[32].mxu1 %vm1008_vm2, %v4485_v49 }
  0x64   : > { %4334 = vmatprep.mubr.msk.bf16.mxu1 %vm1008_vm2, %v4486_v51 }
  0x6a   : > { %4271 = vmatmul.mubr.msk.bf16.gmra.mrb[36].mxu0 %vm1008_vm2, %v4455_v36 }
  0x6b   : > { %4274 = vmatprep.mubr.msk.bf16.mxu0 %vm1008_vm2, %v4456_v38  ;;  %4335 = vmatmul.mubr.msk.bf16.gmra.mrb[36].mxu1 %vm1008_vm2, %v4487_v53 }
  0x6c   : > { %4338 = vmatprep.mubr.msk.bf16.mxu1 %vm1008_vm2, %v4488_v55 }
  0x72   : > { %4275 = vmatmul.mubr.msk.bf16.gmra.mrb[40].mxu0 %vm1008_vm2, %v4457_v40 }
  0x73   : > { %4278 = vmatprep.mubr.msk.bf16.mxu0 %vm1008_vm2, %v4458_v42  ;;  %4339 = vmatmul.mubr.msk.bf16.gmra.mrb[40].mxu1 %vm1008_vm2, %v4489_v57 }
  0x74   : > { %4342 = vmatprep.mubr.msk.bf16.mxu1 %vm1008_vm2, %v4490_v59 }
  0x7a   : > { %4279 = vmatmul.mubr.msk.bf16.gmra.mrb[44].mxu0 %vm1008_vm2, %v4459_v44 }
  0x7b   : > { %4282 = vmatprep.mubr.msk.bf16.mxu0 %vm1008_vm2, %v4460_v46  ;;  %4343 = vmatmul.mubr.msk.bf16.gmra.mrb[44].mxu1 %vm1008_vm2, %v4491_v61 }
  0x7c   : > { %4346 = vmatprep.mubr.msk.bf16.mxu1 %vm1008_vm2, %v4492_v62 }
  0x82   : > { %4283 = vmatmul.mubr.msk.bf16.gmra.mrb[48].mxu0 %vm1008_vm2, %v4461_v48 }
  0x83   : > { %4286 = vmatprep.mubr.msk.bf16.mxu0 %vm1008_vm2, %v4462_v50  ;;  %4347 = vmatmul.mubr.msk.bf16.gmra.mrb[48].mxu1 %vm1008_vm2, %v4493_v63 }
  0x84   : > { %4350 = vmatprep.mubr.msk.bf16.mxu1 %vm1008_vm2, %v4494_v0 }
  0x8a   : > { %4287 = vmatmul.mubr.msk.bf16.gmra.mrb[52].mxu0 %vm1008_vm2, %v4463_v52 }
  0x8b   : > { %4290 = vmatprep.mubr.msk.bf16.mxu0 %vm1008_vm2, %v4464_v54  ;;  %4351 = vmatmul.mubr.msk.bf16.gmra.mrb[52].mxu1 %vm1008_vm2, %v4495_v1 }
  0x8c   : > { %4354 = vmatprep.mubr.msk.bf16.mxu1 %vm1008_vm2, %v4496_v2 }
  0x92   : > { %4291 = vmatmul.mubr.msk.bf16.gmra.mrb[56].mxu0 %vm1008_vm2, %v4465_v56 }
  0x93   : > { %4294 = vmatprep.mubr.msk.bf16.mxu0 %vm1008_vm2, %v4466_v58  ;;  %4355 = vmatmul.mubr.msk.bf16.gmra.mrb[56].mxu1 %vm1008_vm2, %v4497_v3 }
  0x94   : > { %4358 = vmatprep.mubr.msk.bf16.mxu1 %vm1008_vm2, %v4498_v4 }
  0x9a   : > { %4295 = vmatmul.mubr.msk.bf16.gmra.mrb[60].mxu0 %vm1008_vm2, %v4467_v60 }
  0x9b   : > { %4359 = vmatmul.mubr.msk.bf16.gmra.mrb[60].mxu1 %vm1008_vm2, %v4499_v5 }
  0xf5   : > { %v4236_v6 = vpop.f32.mrb[0].mxu0 }
  0xf6   : > { %v1242_v7 = vpop.f32.mrb[1].mxu0  ;;  %v2915_v15 = vmul.f32 %v4236_v6, %v4236_v6 }
  0xf7   : > { %v4237_v8 = vpop.f32.mrb[2].mxu0  ;;  %v2913_v11 = vmul.f32 %v1242_v7, %v1242_v7 }
  0xf8   : > { %v3789_v9 = vpack.c.bf16 %v4237_v8, %v4236_v6  ;;  %v1245_v10 = vpop.f32.mrb[3].mxu0  ;;  %v2916_v18 = vmul.f32 %v4237_v8, %v4237_v8 }
  0xf9   : > { %v3784_v12 = vpack.c.bf16 %v1245_v10, %v1242_v7  ;;  %v2780_v13 = vadd.f32 %v1245_v10, %v1242_v7  ;;  %v2914_v14 = vmul.f32 %v1245_v10, %v1245_v10 }
  0xfa   : > { %4101 = vst [vmem:[%s4874_s14 + $0x8] sm:$0xff] %v3789_v9  }
  0xfb   : > { %3785 = vst [vmem:[%s4874_s14] sm:$0xff] %v3784_v12   ;;  %v2781_v16 = vadd.f32 %v4236_v6, %v2780_v13  ;;  %v3041_v17 = vadd.f32 %v2914_v14, %v2913_v11  ;;  %v4884_v12 = vpop.f32.mrb[0].mxu1 }
  0xfc   : > { %v4886_v14 = vpop.f32.mrb[1].mxu1 }
  0xfd   : > { %v2782_v19 = vadd.f32 %v4237_v8, %v2781_v16  ;;  %v3042_v20 = vadd.f32 %v3041_v17, %v2915_v15  ;;  %v4240_v21 = vpop.f32.mrb[4].mxu0 }
  0xfe   : > { %v1258_v22 = vpop.f32.mrb[5].mxu0  ;;  %v2919_v33 = vmul.f32 %v4240_v21, %v4240_v21 }
  0xff   : > { %v3043_v23 = vadd.f32 %v3042_v20, %v2916_v18  ;;  %v2783_v24 = vadd.f32 %v2782_v19, %v1258_v22  ;;  %v2917_v25 = vmul.f32 %v1258_v22, %v1258_v22  ;;  %v4241_v26 = vpop.f32.mrb[6].mxu0  ;;  %v4888_v19 = vpop.f32.mrb[2].mxu1 }
 0x100   : > { %v3799_v27 = vpack.c.bf16 %v4241_v26, %v4240_v21  ;;  %v1261_v28 = vpop.f32.mrb[7].mxu0  ;;  %v2920_v36 = vmul.f32 %v4241_v26, %v4241_v26 }
 0x101   : > { %v3044_v29 = vadd.f32 %v3043_v23, %v2917_v25  ;;  %v3794_v30 = vpack.c.bf16 %v1261_v28, %v1258_v22  ;;  %v2784_v31 = vadd.f32 %v2783_v24, %v1261_v28  ;;  %v2918_v32 = vmul.f32 %v1261_v28, %v1261_v28  ;;  %v4892_v23 = vpop.f32.mrb[3].mxu1 }
 0x102   : > { %4103 = vst [vmem:[%s4874_s14 + $0x18] sm:$0xff] %v3799_v27   ;;  %v3949_v22 = vpack.c.bf16 %v4888_v19, %v4884_v12  ;;  %v3944_v28 = vpack.c.bf16 %v4892_v23, %v4886_v14 }
 0x103   : > { %4102 = vst [vmem:[%s4874_s14 + $0x10] sm:$0xff] %v3794_v30   ;;  %v2785_v34 = vadd.f32 %v4240_v21, %v2784_v31  ;;  %v3045_v35 = vadd.f32 %v3044_v29, %v2918_v32 }
 0x104   : > { %4133 = vst [vmem:[%s4874_s14 + $0x108] sm:$0xff] %v3949_v22   ;;  %4132 = vst [vmem:[%s4874_s14 + $0x100] sm:$0xff] %v3944_v28  }
 0x105   : > { %v3046_v37 = vadd.f32 %v3045_v35, %v2919_v33  ;;  %v4244_v38 = vpop.f32.mrb[8].mxu0  ;;  %v2786_v39 = vadd.f32 %v4241_v26, %v2785_v34 }
 0x106   : > { %v1274_v40 = vpop.f32.mrb[9].mxu0  ;;  %v2923_v51 = vmul.f32 %v4244_v38, %v4244_v38 }
 0x107   : > { %v2787_v41 = vadd.f32 %v2786_v39, %v1274_v40  ;;  %v2921_v42 = vmul.f32 %v1274_v40, %v1274_v40  ;;  %v3047_v43 = vadd.f32 %v3046_v37, %v2920_v36  ;;  %v4245_v44 = vpop.f32.mrb[10].mxu0  ;;  %v4900_v36 = vpop.f32.mrb[4].mxu1 }
 0x108   : > { %v3809_v45 = vpack.c.bf16 %v4245_v44, %v4244_v38  ;;  %v1277_v46 = vpop.f32.mrb[11].mxu0  ;;  %v2924_v54 = vmul.f32 %v4245_v44, %v4245_v44 }
 0x109   : > { %v3048_v47 = vadd.f32 %v3047_v43, %v2921_v42  ;;  %v3804_v48 = vpack.c.bf16 %v1277_v46, %v1274_v40  ;;  %v2788_v49 = vadd.f32 %v2787_v41, %v1277_v46  ;;  %v2922_v50 = vmul.f32 %v1277_v46, %v1277_v46 }
 0x10a   : > { %4105 = vst [vmem:[%s4874_s14 + $0x28] sm:$0xff] %v3809_v45  }
 0x10b   : > { %4104 = vst [vmem:[%s4874_s14 + $0x20] sm:$0xff] %v3804_v48   ;;  %v2789_v52 = vadd.f32 %v4244_v38, %v2788_v49  ;;  %v3049_v53 = vadd.f32 %v3048_v47, %v2922_v50  ;;  %v4902_v38 = vpop.f32.mrb[5].mxu1 }
 0x10c   : > { %v4904_v43 = vpop.f32.mrb[6].mxu1 }
 0x10d   : > { %v3050_v55 = vadd.f32 %v3049_v53, %v2923_v51  ;;  %v4248_v56 = vpop.f32.mrb[12].mxu0  ;;  %v2790_v57 = vadd.f32 %v4245_v44, %v2789_v52  ;;  %v3959_v46 = vpack.c.bf16 %v4904_v43, %v4900_v36  ;;  %v4908_v47 = vpop.f32.mrb[7].mxu1 }
 0x10e   : > { %v1290_v58 = vpop.f32.mrb[13].mxu0  ;;  %v2927_v5 = vmul.f32 %v4248_v56, %v4248_v56  ;;  %v3954_v52 = vpack.c.bf16 %v4908_v47, %v4902_v38 }
 0x10f   : > { %v2791_v59 = vadd.f32 %v2790_v57, %v1290_v58  ;;  %v2925_v60 = vmul.f32 %v1290_v58, %v1290_v58  ;;  %v3051_v61 = vadd.f32 %v3050_v55, %v2924_v54  ;;  %v4249_v62 = vpop.f32.mrb[14].mxu0  ;;  %4135 = vst [vmem:[%s4874_s14 + $0x118] sm:$0xff] %v3959_v46  }
 0x110   : > { %v3819_v63 = vpack.c.bf16 %v4249_v62, %v4248_v56  ;;  %v1293_v0 = vpop.f32.mrb[15].mxu0  ;;  %v2928_v8 = vmul.f32 %v4249_v62, %v4249_v62  ;;  %4134 = vst [vmem:[%s4874_s14 + $0x110] sm:$0xff] %v3954_v52  }
 0x111   : > { %v3052_v1 = vadd.f32 %v3051_v61, %v2925_v60  ;;  %v3814_v2 = vpack.c.bf16 %v1293_v0, %v1290_v58  ;;  %v2792_v3 = vadd.f32 %v2791_v59, %v1293_v0  ;;  %v2926_v4 = vmul.f32 %v1293_v0, %v1293_v0  ;;  %v4916_v60 = vpop.f32.mrb[8].mxu1 }
 0x112   : > { %4107 = vst [vmem:[%s4874_s14 + $0x38] sm:$0xff] %v3819_v63  }
 0x113   : > { %4106 = vst [vmem:[%s4874_s14 + $0x30] sm:$0xff] %v3814_v2   ;;  %v2793_v6 = vadd.f32 %v4248_v56, %v2792_v3  ;;  %v3053_v7 = vadd.f32 %v3052_v1, %v2926_v4 }
 0x115   : > { %v3054_v9 = vadd.f32 %v3053_v7, %v2927_v5  ;;  %v4252_v10 = vpop.f32.mrb[16].mxu0  ;;  %v2794_v11 = vadd.f32 %v4249_v62, %v2793_v6  ;;  %v4918_v62 = vpop.f32.mrb[9].mxu1 }
 0x116   : > { %v1306_v13 = vpop.f32.mrb[17].mxu0  ;;  %v2931_v29 = vmul.f32 %v4252_v10, %v4252_v10  ;;  %v4920_v3 = vpop.f32.mrb[10].mxu1 }
 0x117   : > { %v2795_v15 = vadd.f32 %v2794_v11, %v1306_v13  ;;  %v2929_v16 = vmul.f32 %v1306_v13, %v1306_v13  ;;  %v3055_v17 = vadd.f32 %v3054_v9, %v2928_v8  ;;  %v4253_v18 = vpop.f32.mrb[18].mxu0  ;;  %v3969_v6 = vpack.c.bf16 %v4920_v3, %v4916_v60  ;;  %v4924_v7 = vpop.f32.mrb[11].mxu1 }
 0x118   : > { %v3829_v20 = vpack.c.bf16 %v4253_v18, %v4252_v10  ;;  %v1309_v21 = vpop.f32.mrb[19].mxu0  ;;  %v2932_v32 = vmul.f32 %v4253_v18, %v4253_v18 }
 0x119   : > { %v3056_v24 = vadd.f32 %v3055_v17, %v2929_v16  ;;  %v3824_v25 = vpack.c.bf16 %v1309_v21, %v1306_v13  ;;  %v2796_v26 = vadd.f32 %v2795_v15, %v1309_v21  ;;  %v2930_v27 = vmul.f32 %v1309_v21, %v1309_v21  ;;  %4137 = vst [vmem:[%s4874_s14 + $0x128] sm:$0xff] %v3969_v6  }
 0x11a   : > { %4109 = vst [vmem:[%s4874_s14 + $0x48] sm:$0xff] %v3829_v20   ;;  %v3964_v13 = vpack.c.bf16 %v4924_v7, %v4918_v62 }
 0x11b   : > { %4108 = vst [vmem:[%s4874_s14 + $0x40] sm:$0xff] %v3824_v25   ;;  %v2797_v30 = vadd.f32 %v4252_v10, %v2796_v26  ;;  %v3057_v31 = vadd.f32 %v3056_v24, %v2930_v27  ;;  %v4932_v24 = vpop.f32.mrb[12].mxu1 }
 0x11c   : > { %4136 = vst [vmem:[%s4874_s14 + $0x120] sm:$0xff] %v3964_v13   ;;  %v4934_v26 = vpop.f32.mrb[13].mxu1 }
 0x11d   : > { %v3058_v33 = vadd.f32 %v3057_v31, %v2931_v29  ;;  %v4256_v34 = vpop.f32.mrb[20].mxu0  ;;  %v2798_v35 = vadd.f32 %v4253_v18, %v2797_v30  ;;  %v4936_v31 = vpop.f32.mrb[14].mxu1 }
 0x11e   : > { %v1322_v37 = vpop.f32.mrb[21].mxu0  ;;  %v2935_v53 = vmul.f32 %v4256_v34, %v4256_v34 }
 0x11f   : > { %v2799_v39 = vadd.f32 %v2798_v35, %v1322_v37  ;;  %v2933_v40 = vmul.f32 %v1322_v37, %v1322_v37  ;;  %v3059_v41 = vadd.f32 %v3058_v33, %v2932_v32  ;;  %v4257_v42 = vpop.f32.mrb[22].mxu0  ;;  %v4940_v35 = vpop.f32.mrb[15].mxu1 }
 0x120   : > { %v3839_v44 = vpack.c.bf16 %v4257_v42, %v4256_v34  ;;  %v1325_v45 = vpop.f32.mrb[23].mxu0  ;;  %v2936_v56 = vmul.f32 %v4257_v42, %v4257_v42  ;;  %v4948_v52 = vpop.f32.mrb[16].mxu1 }
 0x121   : > { %v3060_v48 = vadd.f32 %v3059_v41, %v2933_v40  ;;  %v3834_v49 = vpack.c.bf16 %v1325_v45, %v1322_v37  ;;  %v2800_v50 = vadd.f32 %v2799_v39, %v1325_v45  ;;  %v2934_v51 = vmul.f32 %v1325_v45, %v1325_v45 }
 0x122   : > { %4111 = vst [vmem:[%s4874_s14 + $0x58] sm:$0xff] %v3839_v44  }
 0x123   : > { %4110 = vst [vmem:[%s4874_s14 + $0x50] sm:$0xff] %v3834_v49   ;;  %v2801_v54 = vadd.f32 %v4256_v34, %v2800_v50  ;;  %v3061_v55 = vadd.f32 %v3060_v48, %v2934_v51  ;;  %v3979_v34 = vpack.c.bf16 %v4936_v31, %v4932_v24 }
 0x125   : > { %v3062_v57 = vadd.f32 %v3061_v55, %v2935_v53  ;;  %v4260_v58 = vpop.f32.mrb[24].mxu0  ;;  %v2802_v59 = vadd.f32 %v4257_v42, %v2801_v54  ;;  %4139 = vst [vmem:[%s4874_s14 + $0x138] sm:$0xff] %v3979_v34   ;;  %v3974_v42 = vpack.c.bf16 %v4940_v35, %v4934_v26  ;;  %v4950_v54 = vpop.f32.mrb[17].mxu1 }
 0x126   : > { %v1338_v61 = vpop.f32.mrb[25].mxu0  ;;  %v2939_v15 = vmul.f32 %v4260_v58, %v4260_v58 }
 0x127   : > { %v2803_v63 = vadd.f32 %v2802_v59, %v1338_v61  ;;  %v2937_v0 = vmul.f32 %v1338_v61, %v1338_v61  ;;  %v3063_v1 = vadd.f32 %v3062_v57, %v2936_v56  ;;  %v4261_v2 = vpop.f32.mrb[26].mxu0  ;;  %4138 = vst [vmem:[%s4874_s14 + $0x130] sm:$0xff] %v3974_v42   ;;  %v4952_v59 = vpop.f32.mrb[18].mxu1 }
 0x128   : > { %v3849_v4 = vpack.c.bf16 %v4261_v2, %v4260_v58  ;;  %v1341_v5 = vpop.f32.mrb[27].mxu0  ;;  %v2940_v18 = vmul.f32 %v4261_v2, %v4261_v2 }
 0x129   : > { %v3064_v8 = vadd.f32 %v3063_v1, %v2937_v0  ;;  %v3844_v9 = vpack.c.bf16 %v1341_v5, %v1338_v61  ;;  %v2804_v10 = vadd.f32 %v2803_v63, %v1341_v5  ;;  %v2938_v11 = vmul.f32 %v1341_v5, %v1341_v5  ;;  %v4956_v1 = vpop.f32.mrb[19].mxu1 }
 0x12a   : > { %4113 = vst [vmem:[%s4874_s14 + $0x68] sm:$0xff] %v3849_v4   ;;  %v3989_v0 = vpack.c.bf16 %v4952_v59, %v4948_v52 }
 0x12b   : > { %4112 = vst [vmem:[%s4874_s14 + $0x60] sm:$0xff] %v3844_v9   ;;  %v2805_v16 = vadd.f32 %v4260_v58, %v2804_v10  ;;  %v3065_v17 = vadd.f32 %v3064_v8, %v2938_v11  ;;  %v3984_v8 = vpack.c.bf16 %v4956_v1, %v4950_v54 }
 0x12c   : > { %4141 = vst [vmem:[%s4874_s14 + $0x148] sm:$0xff] %v3989_v0  }
 0x12d   : > { %v3066_v20 = vadd.f32 %v3065_v17, %v2939_v15  ;;  %v4264_v21 = vpop.f32.mrb[28].mxu0  ;;  %v2806_v22 = vadd.f32 %v4261_v2, %v2805_v16  ;;  %4140 = vst [vmem:[%s4874_s14 + $0x140] sm:$0xff] %v3984_v8  }
 0x12e   : > { %v1354_v25 = vpop.f32.mrb[29].mxu0  ;;  %v2943_v44 = vmul.f32 %v4264_v21, %v4264_v21 }
 0x12f   : > { %v2807_v27 = vadd.f32 %v2806_v22, %v1354_v25  ;;  %v2941_v28 = vmul.f32 %v1354_v25, %v1354_v25  ;;  %v3067_v29 = vadd.f32 %v3066_v20, %v2940_v18  ;;  %v4265_v30 = vpop.f32.mrb[30].mxu0  ;;  %v4964_v18 = vpop.f32.mrb[20].mxu1 }
 0x130   : > { %v3859_v32 = vpack.c.bf16 %v4265_v30, %v4264_v21  ;;  %v1357_v33 = vpop.f32.mrb[31].mxu0  ;;  %v2944_v48 = vmul.f32 %v4265_v30, %v4265_v30 }
 0x131   : > { %v3068_v37 = vadd.f32 %v3067_v29, %v2941_v28  ;;  %v3854_v39 = vpack.c.bf16 %v1357_v33, %v1354_v25  ;;  %v2808_v40 = vadd.f32 %v2807_v27, %v1357_v33  ;;  %v2942_v41 = vmul.f32 %v1357_v33, %v1357_v33 }
 0x132   : > { %4115 = vst [vmem:[%s4874_s14 + $0x78] sm:$0xff] %v3859_v32  }
 0x133   : > { %4114 = vst [vmem:[%s4874_s14 + $0x70] sm:$0xff] %v3854_v39   ;;  %v2809_v45 = vadd.f32 %v4264_v21, %v2808_v40  ;;  %v3069_v46 = vadd.f32 %v3068_v37, %v2942_v41  ;;  %v4966_v21 = vpop.f32.mrb[21].mxu1 }
 0x134   : > { %v4968_v29 = vpop.f32.mrb[22].mxu1 }
 0x135   : > { %v3070_v49 = vadd.f32 %v3069_v46, %v2943_v44  ;;  %v4268_v50 = vpop.f32.mrb[32].mxu0  ;;  %v2810_v51 = vadd.f32 %v4265_v30, %v2809_v45  ;;  %v3999_v33 = vpack.c.bf16 %v4968_v29, %v4964_v18  ;;  %v4972_v34 = vpop.f32.mrb[23].mxu1 }
 0x136   : > { %v1370_v53 = vpop.f32.mrb[33].mxu0  ;;  %v2947_v9 = vmul.f32 %v4268_v50, %v4268_v50  ;;  %v3994_v42 = vpack.c.bf16 %v4972_v34, %v4966_v21 }
 0x137   : > { %v2811_v55 = vadd.f32 %v2810_v51, %v1370_v53  ;;  %v2945_v56 = vmul.f32 %v1370_v53, %v1370_v53  ;;  %v3071_v57 = vadd.f32 %v3070_v49, %v2944_v48  ;;  %v4269_v58 = vpop.f32.mrb[34].mxu0  ;;  %4143 = vst [vmem:[%s4874_s14 + $0x158] sm:$0xff] %v3999_v33  }
 0x138   : > { %v3869_v61 = vpack.c.bf16 %v4269_v58, %v4268_v50  ;;  %v1373_v63 = vpop.f32.mrb[35].mxu0  ;;  %v2948_v13 = vmul.f32 %v4269_v58, %v4269_v58  ;;  %4142 = vst [vmem:[%s4874_s14 + $0x150] sm:$0xff] %v3994_v42  }
 0x139   : > { %v3072_v2 = vadd.f32 %v3071_v57, %v2945_v56  ;;  %v3864_v4 = vpack.c.bf16 %v1373_v63, %v1370_v53  ;;  %v2812_v5 = vadd.f32 %v2811_v55, %v1373_v63  ;;  %v2946_v6 = vmul.f32 %v1373_v63, %v1373_v63  ;;  %v4980_v53 = vpop.f32.mrb[24].mxu1 }
 0x13a   : > { %4117 = vst [vmem:[%s4874_s14 + $0x88] sm:$0xff] %v3869_v61   ;;  %v4982_v56 = vpop.f32.mrb[25].mxu1 }
 0x13b   : > { %4116 = vst [vmem:[%s4874_s14 + $0x80] sm:$0xff] %v3864_v4   ;;  %v2813_v10 = vadd.f32 %v4268_v50, %v2812_v5  ;;  %v3073_v11 = vadd.f32 %v3072_v2, %v2946_v6  ;;  %v4984_v0 = vpop.f32.mrb[26].mxu1 }
 0x13c   : > { %v4009_v5 = vpack.c.bf16 %v4984_v0, %v4980_v53  ;;  %v4988_v6 = vpop.f32.mrb[27].mxu1 }
 0x13d   : > { %v3074_v15 = vadd.f32 %v3073_v11, %v2947_v9  ;;  %v4272_v16 = vpop.f32.mrb[36].mxu0  ;;  %v2814_v17 = vadd.f32 %v4269_v58, %v2813_v10 }
 0x13e   : > { %v1386_v20 = vpop.f32.mrb[37].mxu0  ;;  %v2951_v44 = vmul.f32 %v4272_v16, %v4272_v16  ;;  %4145 = vst [vmem:[%s4874_s14 + $0x168] sm:$0xff] %v4009_v5  }
 0x13f   : > { %v2815_v22 = vadd.f32 %v2814_v17, %v1386_v20  ;;  %v2949_v25 = vmul.f32 %v1386_v20, %v1386_v20  ;;  %v3075_v27 = vadd.f32 %v3074_v15, %v2948_v13  ;;  %v4273_v28 = vpop.f32.mrb[38].mxu0  ;;  %v4004_v13 = vpack.c.bf16 %v4988_v6, %v4982_v56 }
 0x140   : > { %v3879_v30 = vpack.c.bf16 %v4273_v28, %v4272_v16  ;;  %v1389_v32 = vpop.f32.mrb[39].mxu0  ;;  %v2952_v48 = vmul.f32 %v4273_v28, %v4273_v28 }
 0x141   : > { %v3076_v37 = vadd.f32 %v3075_v27, %v2949_v25  ;;  %v3874_v39 = vpack.c.bf16 %v1389_v32, %v1386_v20  ;;  %v2816_v40 = vadd.f32 %v2815_v22, %v1389_v32  ;;  %v2950_v41 = vmul.f32 %v1389_v32, %v1389_v32  ;;  %4144 = vst [vmem:[%s4874_s14 + $0x160] sm:$0xff] %v4004_v13  }
 0x142   : > { %4119 = vst [vmem:[%s4874_s14 + $0x98] sm:$0xff] %v3879_v30  }
 0x143   : > { %4118 = vst [vmem:[%s4874_s14 + $0x90] sm:$0xff] %v3874_v39   ;;  %v2817_v45 = vadd.f32 %v4272_v16, %v2816_v40  ;;  %v3077_v46 = vadd.f32 %v3076_v37, %v2950_v41 }
 0x145   : > { %v3078_v49 = vadd.f32 %v3077_v46, %v2951_v44  ;;  %v4276_v50 = vpop.f32.mrb[40].mxu0  ;;  %v2818_v51 = vadd.f32 %v4273_v28, %v2817_v45  ;;  %v4996_v28 = vpop.f32.mrb[28].mxu1 }
 0x146   : > { %v1402_v55 = vpop.f32.mrb[41].mxu0  ;;  %v2955_v15 = vmul.f32 %v4276_v50, %v4276_v50  ;;  %v4998_v32 = vpop.f32.mrb[29].mxu1 }
 0x147   : > { %v2819_v57 = vadd.f32 %v2818_v51, %v1402_v55  ;;  %v2953_v58 = vmul.f32 %v1402_v55, %v1402_v55  ;;  %v3079_v61 = vadd.f32 %v3078_v49, %v2952_v48  ;;  %v4277_v63 = vpop.f32.mrb[42].mxu0  ;;  %v5000_v41 = vpop.f32.mrb[30].mxu1 }
 0x148   : > { %v3889_v2 = vpack.c.bf16 %v4277_v63, %v4276_v50  ;;  %v1405_v4 = vpop.f32.mrb[43].mxu0  ;;  %v2956_v20 = vmul.f32 %v4277_v63, %v4277_v63  ;;  %v4019_v45 = vpack.c.bf16 %v5000_v41, %v4996_v28  ;;  %v5004_v46 = vpop.f32.mrb[31].mxu1 }
 0x149   : > { %v3080_v8 = vadd.f32 %v3079_v61, %v2953_v58  ;;  %v3884_v9 = vpack.c.bf16 %v1405_v4, %v1402_v55  ;;  %v2820_v10 = vadd.f32 %v2819_v57, %v1405_v4  ;;  %v2954_v11 = vmul.f32 %v1405_v4, %v1405_v4 }
 0x14a   : > { %4121 = vst [vmem:[%s4874_s14 + $0xa8] sm:$0xff] %v3889_v2   ;;  %4147 = vst [vmem:[%s4874_s14 + $0x178] sm:$0xff] %v4019_v45   ;;  %v4014_v55 = vpack.c.bf16 %v5004_v46, %v4998_v32 }
 0x14b   : > { %4120 = vst [vmem:[%s4874_s14 + $0xa0] sm:$0xff] %v3884_v9   ;;  %v2821_v16 = vadd.f32 %v4276_v50, %v2820_v10  ;;  %v3081_v17 = vadd.f32 %v3080_v8, %v2954_v11  ;;  %v5012_v8 = vpop.f32.mrb[32].mxu1 }
 0x14c   : > { %4146 = vst [vmem:[%s4874_s14 + $0x170] sm:$0xff] %v4014_v55   ;;  %v5014_v10 = vpop.f32.mrb[33].mxu1 }
 0x14d   : > { %v3082_v22 = vadd.f32 %v3081_v17, %v2955_v15  ;;  %v4280_v25 = vpop.f32.mrb[44].mxu0  ;;  %v2822_v27 = vadd.f32 %v4277_v63, %v2821_v16  ;;  %v5016_v17 = vpop.f32.mrb[34].mxu1 }
 0x14e   : > { %v1418_v30 = vpop.f32.mrb[45].mxu0  ;;  %v2959_v57 = vmul.f32 %v4280_v25, %v4280_v25 }
 0x14f   : > { %v2823_v33 = vadd.f32 %v2822_v27, %v1418_v30  ;;  %v2957_v37 = vmul.f32 %v1418_v30, %v1418_v30  ;;  %v3083_v39 = vadd.f32 %v3082_v22, %v2956_v20  ;;  %v4281_v40 = vpop.f32.mrb[46].mxu0  ;;  %v5020_v27 = vpop.f32.mrb[35].mxu1 }
 0x150   : > { %v3899_v42 = vpack.c.bf16 %v4281_v40, %v4280_v25  ;;  %v1421_v44 = vpop.f32.mrb[47].mxu0  ;;  %v2960_v63 = vmul.f32 %v4281_v40, %v4281_v40  ;;  %v5028_v55 = vpop.f32.mrb[36].mxu1 }
 0x151   : > { %v3084_v48 = vadd.f32 %v3083_v39, %v2957_v37  ;;  %v3894_v49 = vpack.c.bf16 %v1421_v44, %v1418_v30  ;;  %v2824_v50 = vadd.f32 %v2823_v33, %v1421_v44  ;;  %v2958_v51 = vmul.f32 %v1421_v44, %v1421_v44 }
 0x152   : > { %4123 = vst [vmem:[%s4874_s14 + $0xb8] sm:$0xff] %v3899_v42  }
 0x153   : > { %4122 = vst [vmem:[%s4874_s14 + $0xb0] sm:$0xff] %v3894_v49   ;;  %v2825_v58 = vadd.f32 %v4280_v25, %v2824_v50  ;;  %v3085_v61 = vadd.f32 %v3084_v48, %v2958_v51  ;;  %v4029_v25 = vpack.c.bf16 %v5016_v17, %v5012_v8 }
 0x155   : > { %v3086_v2 = vadd.f32 %v3085_v61, %v2959_v57  ;;  %v4284_v4 = vpop.f32.mrb[48].mxu0  ;;  %v2826_v5 = vadd.f32 %v4281_v40, %v2825_v58  ;;  %4149 = vst [vmem:[%s4874_s14 + $0x188] sm:$0xff] %v4029_v25   ;;  %v4024_v40 = vpack.c.bf16 %v5020_v27, %v5014_v10  ;;  %v5030_v58 = vpop.f32.mrb[37].mxu1 }
 0x156   : > { %v1434_v9 = vpop.f32.mrb[49].mxu0  ;;  %v2963_v42 = vmul.f32 %v4284_v4, %v4284_v4 }
 0x157   : > { %v2827_v11 = vadd.f32 %v2826_v5, %v1434_v9  ;;  %v2961_v13 = vmul.f32 %v1434_v9, %v1434_v9  ;;  %v3087_v15 = vadd.f32 %v3086_v2, %v2960_v63  ;;  %v4285_v16 = vpop.f32.mrb[50].mxu0  ;;  %4148 = vst [vmem:[%s4874_s14 + $0x180] sm:$0xff] %v4024_v40  }
 0x158   : > { %v3909_v20 = vpack.c.bf16 %v4285_v16, %v4284_v4  ;;  %v1437_v22 = vpop.f32.mrb[51].mxu0  ;;  %v2964_v48 = vmul.f32 %v4285_v16, %v4285_v16 }
 0x159   : > { %v3088_v30 = vadd.f32 %v3087_v15, %v2961_v13  ;;  %v3904_v33 = vpack.c.bf16 %v1437_v22, %v1434_v9  ;;  %v2828_v37 = vadd.f32 %v2827_v11, %v1437_v22  ;;  %v2962_v39 = vmul.f32 %v1437_v22, %v1437_v22  ;;  %v5032_v9 = vpop.f32.mrb[38].mxu1 }
 0x15a   : > { %4125 = vst [vmem:[%s4874_s14 + $0xc8] sm:$0xff] %v3909_v20   ;;  %v4039_v13 = vpack.c.bf16 %v5032_v9, %v5028_v55  ;;  %v5036_v15 = vpop.f32.mrb[39].mxu1 }
 0x15b   : > { %4124 = vst [vmem:[%s4874_s14 + $0xc0] sm:$0xff] %v3904_v33   ;;  %v2829_v44 = vadd.f32 %v4284_v4, %v2828_v37  ;;  %v3089_v45 = vadd.f32 %v3088_v30, %v2962_v39  ;;  %v4034_v30 = vpack.c.bf16 %v5036_v15, %v5030_v58 }
 0x15c   : > { %4151 = vst [vmem:[%s4874_s14 + $0x198] sm:$0xff] %v4039_v13  }
 0x15d   : > { %v3090_v49 = vadd.f32 %v3089_v45, %v2963_v42  ;;  %v4288_v50 = vpop.f32.mrb[52].mxu0  ;;  %v2830_v51 = vadd.f32 %v4285_v16, %v2829_v44  ;;  %4150 = vst [vmem:[%s4874_s14 + $0x190] sm:$0xff] %v4034_v30  }
 0x15e   : > { %v1450_v57 = vpop.f32.mrb[53].mxu0  ;;  %v2967_v33 = vmul.f32 %v4288_v50, %v4288_v50 }
 0x15f   : > { %v2831_v61 = vadd.f32 %v2830_v51, %v1450_v57  ;;  %v2965_v63 = vmul.f32 %v1450_v57, %v1450_v57  ;;  %v3091_v2 = vadd.f32 %v3090_v49, %v2964_v48  ;;  %v4289_v5 = vpop.f32.mrb[54].mxu0  ;;  %v5044_v48 = vpop.f32.mrb[40].mxu1 }
 0x160   : > { %v3919_v4 = vpack.c.bf16 %v4289_v5, %v4288_v50  ;;  %v1453_v11 = vpop.f32.mrb[55].mxu0  ;;  %v2968_v40 = vmul.f32 %v4289_v5, %v4289_v5  ;;  %5468 = vst [vmem:[#allocation10_spill] sm:$0xff] %v5044_v48  ;;  %v5046_v51 = vpop.f32.mrb[41].mxu1 }
 0x161   : > { %v3092_v16 = vadd.f32 %v3091_v2, %v2965_v63  ;;  %v3914_v20 = vpack.c.bf16 %v1453_v11, %v1450_v57  ;;  %v2832_v22 = vadd.f32 %v2831_v61, %v1453_v11  ;;  %v2966_v25 = vmul.f32 %v1453_v11, %v1453_v11 }
 0x162   : > { %4127 = vst [vmem:[%s4874_s14 + $0xd8] sm:$0xff] %v3919_v4   ;;  %v5048_v4 = vpop.f32.mrb[42].mxu1 }
 0x163   : > { %4126 = vst [vmem:[%s4874_s14 + $0xd0] sm:$0xff] %v3914_v20   ;;  %v2833_v37 = vadd.f32 %v4288_v50, %v2832_v22  ;;  %v3093_v39 = vadd.f32 %v3092_v16, %v2966_v25  ;;  %5469 = vst [vmem:[#allocation11_spill] sm:$0xff] %v5048_v4  ;;  %v5052_v13 = vpop.f32.mrb[43].mxu1 }
 0x164   : > { %5470 = vst [vmem:[#allocation12_spill] sm:$0xff] %v5052_v13  ;;  %v4044_v30 = vpack.c.bf16 %v5052_v13, %v5046_v51 }
 0x165   : > { %v3094_v42 = vadd.f32 %v3093_v39, %v2967_v33  ;;  %v4292_v44 = vpop.f32.mrb[56].mxu0  ;;  %v2834_v45 = vadd.f32 %v4289_v5, %v2833_v37  ;;  %v4049_v5 = vpack.c.bf16 %v5048_v4, %v5044_v48  ;;  %v5060_v48 = vpop.f32.mrb[44].mxu1 }
 0x166   : > { %v1466_v49 = vpop.f32.mrb[57].mxu0  ;;  %v2971_v33 = vmul.f32 %v4292_v44, %v4292_v44  ;;  %4152 = vst [vmem:[%s4874_s14 + $0x1a0] sm:$0xff] %v4044_v30  }
 0x167   : > { %v2835_v57 = vadd.f32 %v2834_v45, %v1466_v49  ;;  %v2969_v61 = vmul.f32 %v1466_v49, %v1466_v49  ;;  %v3095_v63 = vadd.f32 %v3094_v42, %v2968_v40  ;;  %v4293_v2 = vpop.f32.mrb[58].mxu0  ;;  %4153 = vst [vmem:[%s4874_s14 + $0x1a8] sm:$0xff] %v4049_v5  }
 0x168   : > { %v3929_v50 = vpack.c.bf16 %v4293_v2, %v4292_v44  ;;  %v1469_v11 = vpop.f32.mrb[59].mxu0  ;;  %v2972_v40 = vmul.f32 %v4293_v2, %v4293_v2 }
 0x169   : > { %v3096_v16 = vadd.f32 %v3095_v63, %v2969_v61  ;;  %v3924_v20 = vpack.c.bf16 %v1469_v11, %v1466_v49  ;;  %v2836_v22 = vadd.f32 %v2835_v57, %v1469_v11  ;;  %v2970_v25 = vmul.f32 %v1469_v11, %v1469_v11  ;;  %v5062_v57 = vpop.f32.mrb[45].mxu1 }
 0x16a   : > { %4129 = vst [vmem:[%s4874_s14 + $0xe8] sm:$0xff] %v3929_v50   ;;  %v5064_v5 = vpop.f32.mrb[46].mxu1 }
 0x16b   : > { %4128 = vst [vmem:[%s4874_s14 + $0xe0] sm:$0xff] %v3924_v20   ;;  %v2837_v37 = vadd.f32 %v4292_v44, %v2836_v22  ;;  %v3097_v39 = vadd.f32 %v3096_v16, %v2970_v25  ;;  %5471 = vst [vmem:[#allocation13_spill] sm:$0xff] %v5064_v5  ;;  %v5068_v20 = vpop.f32.mrb[47].mxu1 }
 0x16d   : > { %v3098_v42 = vadd.f32 %v3097_v39, %v2971_v33  ;;  %v4296_v45 = vpop.f32.mrb[60].mxu0  ;;  %v2838_v4 = vadd.f32 %v4293_v2, %v2837_v37  ;;  %v4059_v2 = vpack.c.bf16 %v5064_v5, %v5060_v48 }
 0x16e   : > { %v1482_v49 = vpop.f32.mrb[61].mxu0  ;;  %v2975_v37 = vmul.f32 %v4296_v45, %v4296_v45 }
 0x16f   : > { %v2839_v61 = vadd.f32 %v2838_v4, %v1482_v49  ;;  %v2973_v63 = vmul.f32 %v1482_v49, %v1482_v49  ;;  %v3099_v50 = vadd.f32 %v3098_v42, %v2972_v40  ;;  %v4297_v11 = vpop.f32.mrb[62].mxu0  ;;  %4155 = vst [vmem:[%s4874_s14 + $0x1b8] sm:$0xff] %v4059_v2   ;;  %v4054_v4 = vpack.c.bf16 %v5068_v20, %v5062_v57 }
 0x170   : > { %v3939_v44 = vpack.c.bf16 %v4297_v11, %v4296_v45  ;;  %v1485_v16 = vpop.f32.mrb[63].mxu0  ;;  %v2976_v42 = vmul.f32 %v4297_v11, %v4297_v11 }
 0x171   : > { %v3100_v22 = vadd.f32 %v3099_v50, %v2973_v63  ;;  %v3934_v25 = vpack.c.bf16 %v1485_v16, %v1482_v49  ;;  %v2840_v30 = vadd.f32 %v2839_v61, %v1485_v16  ;;  %v2974_v33 = vmul.f32 %v1485_v16, %v1485_v16  ;;  %4154 = vst [vmem:[%s4874_s14 + $0x1b0] sm:$0xff] %v4054_v4   ;;  %v5078_v49 = vpop.f32.mrb[48].mxu1 }
 0x172   : > { %4131 = vst [vmem:[%s4874_s14 + $0xf8] sm:$0xff] %v3939_v44   ;;  %v2977_v63 = vmul.f32 %v4886_v14, %v4886_v14  ;;  %v5080_v61 = vpop.f32.mrb[49].mxu1 }
 0x173   : > { %4130 = vst [vmem:[%s4874_s14 + $0xf0] sm:$0xff] %v3934_v25   ;;  %v2841_v39 = vadd.f32 %v4296_v45, %v2840_v30  ;;  %v3101_v40 = vadd.f32 %v3100_v22, %v2974_v33  ;;  %v5083_v16 = vpop.f32.mrb[50].mxu1  ;;  %v2978_v25 = vmul.f32 %v4892_v23, %v4892_v23  ;;  %v2980_v33 = vmul.f32 %v4888_v19, %v4888_v19 }
 0x174   : > { %v4069_v45 = vpack.c.bf16 %v5083_v16, %v5078_v49  ;;  %v5087_v2 = vpop.f32.mrb[51].mxu1 }
 0x175   : > { %v2842_v13 = vadd.f32 %v4297_v11, %v2841_v39  ;;  %v3102_v5 = vadd.f32 %v3101_v40, %v2975_v37  ;;  %v4064_v30 = vpack.c.bf16 %v5087_v2, %v5080_v61  ;;  %v5104_v39 = vpop.f32.mrb[52].mxu1 }
 0x176   : > { %4157 = vst [vmem:[%s4874_s14 + $0x1c8] sm:$0xff] %v4069_v45   ;;  %v5106_v40 = vpop.f32.mrb[53].mxu1 }
 0x177   : > { %v3103_v50 = vadd.f32 %v3102_v5, %v2976_v42  ;;  %v2843_v44 = vadd.f32 %v2842_v13, %v4886_v14  ;;  %v2979_v14 = vmul.f32 %v4884_v12, %v4884_v12  ;;  %4156 = vst [vmem:[%s4874_s14 + $0x1c0] sm:$0xff] %v4064_v30  }
 0x179   : > { %v3104_v11 = vadd.f32 %v3103_v50, %v2977_v63  ;;  %v2844_v22 = vadd.f32 %v2843_v44, %v4892_v23  ;;  %v2981_v23 = vmul.f32 %v4902_v38, %v4902_v38  ;;  %v5109_v63 = vpop.f32.mrb[54].mxu1 }
 0x17a   : > { %v4079_v50 = vpack.c.bf16 %v5109_v63, %v5104_v39  ;;  %v5113_v44 = vpop.f32.mrb[55].mxu1 }
 0x17b   : > { %v2845_v13 = vadd.f32 %v4884_v12, %v2844_v22  ;;  %v3105_v5 = vadd.f32 %v3104_v11, %v2978_v25  ;;  %v2982_v11 = vmul.f32 %v4908_v47, %v4908_v47  ;;  %v4074_v22 = vpack.c.bf16 %v5113_v44, %v5106_v40 }
 0x17c   : > { %4159 = vst [vmem:[%s4874_s14 + $0x1d8] sm:$0xff] %v4079_v50  }
 0x17d   : > { %v3106_v4 = vadd.f32 %v3105_v5, %v2979_v14  ;;  %v2846_v37 = vadd.f32 %v4888_v19, %v2845_v13  ;;  %4158 = vst [vmem:[%s4874_s14 + $0x1d0] sm:$0xff] %v4074_v22   ;;  %v2984_v14 = vmul.f32 %v4904_v43, %v4904_v43 }
 0x17f   : > { %v2847_v42 = vadd.f32 %v2846_v37, %v4902_v38  ;;  %v3107_v12 = vadd.f32 %v3106_v4, %v2980_v33  ;;  %v2983_v38 = vmul.f32 %v4900_v36, %v4900_v36  ;;  %v5130_v33 = vpop.f32.mrb[56].mxu1 }
 0x180   : > { %v5132_v4 = vpop.f32.mrb[57].mxu1 }
 0x181   : > { %v3108_v45 = vadd.f32 %v3107_v12, %v2981_v23  ;;  %v2848_v19 = vadd.f32 %v2847_v42, %v4908_v47  ;;  %v2985_v47 = vmul.f32 %v4918_v62, %v4918_v62  ;;  %v5135_v23 = vpop.f32.mrb[58].mxu1 }
 0x182   : > { %v4089_v42 = vpack.c.bf16 %v5135_v23, %v5130_v33  ;;  %v5139_v12 = vpop.f32.mrb[59].mxu1 }
 0x183   : > { %v2849_v25 = vadd.f32 %v4900_v36, %v2848_v19  ;;  %v3109_v30 = vadd.f32 %v3108_v45, %v2982_v11  ;;  %v2986_v45 = vmul.f32 %v4924_v7, %v4924_v7  ;;  %v4084_v19 = vpack.c.bf16 %v5139_v12, %v5132_v4 }
 0x184   : > { %4161 = vst [vmem:[%s4874_s14 + $0x1e8] sm:$0xff] %v4089_v42   ;;  %v2990_v42 = vmul.f32 %v4940_v35, %v4940_v35 }
 0x185   : > { %v3110_v13 = vadd.f32 %v3109_v30, %v2983_v38  ;;  %v2850_v5 = vadd.f32 %v4904_v43, %v2849_v25  ;;  %4160 = vst [vmem:[%s4874_s14 + $0x1e0] sm:$0xff] %v4084_v19   ;;  %v2988_v38 = vmul.f32 %v4920_v3, %v4920_v3 }
 0x187   : > { %v2851_v37 = vadd.f32 %v2850_v5, %v4918_v62  ;;  %v3111_v36 = vadd.f32 %v3110_v13, %v2984_v14  ;;  %v2987_v62 = vmul.f32 %v4916_v60, %v4916_v60  ;;  %v5156_v14 = vpop.f32.mrb[60].mxu1 }
 0x188   : > { %v5160_v13 = vpop.f32.mrb[61].mxu1 }
 0x189   : > { %v3112_v43 = vadd.f32 %v3111_v36, %v2985_v47  ;;  %v2852_v50 = vadd.f32 %v2851_v37, %v4924_v7  ;;  %v2989_v7 = vmul.f32 %v4934_v26, %v4934_v26  ;;  %v5163_v47 = vpop.f32.mrb[62].mxu1 }
 0x18a   : > { %v5167_v37 = vpop.f32.mrb[63].mxu1 }
 0x18b   : > { %v2853_v11 = vadd.f32 %v4916_v60, %v2852_v50  ;;  %v3113_v22 = vadd.f32 %v3112_v43, %v2986_v45  ;;  %v4094_v43 = vpack.c.bf16 %v5167_v37, %v5160_v13  ;;  %v2991_v50 = vmul.f32 %v4932_v24, %v4932_v24 }
 0x18d   : > { %v3114_v25 = vadd.f32 %v3113_v22, %v2987_v62  ;;  %v2854_v30 = vadd.f32 %v4920_v3, %v2853_v11  ;;  %v4099_v3 = vpack.c.bf16 %v5163_v47, %v5156_v14  ;;  %4162 = vst [vmem:[%s4874_s14 + $0x1f0] sm:$0xff] %v4094_v43  }
 0x18f   : > { %v2855_v60 = vadd.f32 %v2854_v30, %v4934_v26  ;;  %v3115_v5 = vadd.f32 %v3114_v25, %v2988_v38  ;;  %4163 = vst [vmem:[%s4874_s14 + $0x1f8] sm:$0xff] %v4099_v3  }
 0x191   : > { %v3116_v26 = vadd.f32 %v3115_v5, %v2989_v7  ;;  %v2856_v36 = vadd.f32 %v2855_v60, %v4940_v35 }
 0x193   : > { %v2857_v45 = vadd.f32 %v4932_v24, %v2856_v36  ;;  %v3117_v19 = vadd.f32 %v3116_v26, %v2990_v42 }
 0x194   : > { %4513 = shalt.err (!%p4510_p5)
}
 0x195   : > { %s4514_s11 = scalar_lea.hbm %s5172_s5, 8192  ;;  %s4518_s24 = scalar_lea.hbm %s5455_s2, 16384 }
 0x196   : > { %p4515_p6 = scmp.ne.s32.totalorder %s5172_s5, %s4514_s11  ;;  %p4519_p10 = scmp.lt.u32.totalorder %s5172_s5, %s5455_s2 }
 0x197   : > { %p4520_p11 = scmp.lt.u32.totalorder %s4518_s24, %s4514_s11  ;;  %p4522_p13 = scmp.lt.u32.totalorder %s4514_s11, %s5172_s5 }
 0x198   : > { %p4516_p7 = pnand %p4515_p6, %p4713_p4 }
 0x199   : > { %p4521_p12 = por %p4520_p11, %p4519_p10 }
 0x19a   : > { %p4517_p9 = pneg %p4516_p7 }
 0x19b   : > { %p4523_p0 = por %p4522_p13, %p4521_p12 }
 0x19d   : > { %p4524_p1 = pnand %p4523_p0, %p4517_p9 }
 0x19f   : > { %4527 = shalt.err (!%p4524_p1)
}
 0x1a0   : > { %s4642_s7 = smov 64   ;;  %s4643_s8 = smov 4   ;;  %v2992_v24 = vmul.f32 %v4936_v31, %v4936_v31  ;;  %v3118_v35 = vadd.f32 %v3117_v19, %v2991_v50  ;;  %v2858_v62 = vadd.f32 %v4936_v31, %v2857_v45  ;;  %v2993_v11 = vmul.f32 %v4950_v54, %v4950_v54 }
 0x1a1   : > { %4366 = dma.vmem_to_hbm [thread:$0]  (%p4713_p4), %s5174_s26, 8192, %s5172_s5, %s3177_s6, %s4642_s7, %s4642_s7, %s4643_s8   ;;  %v2994_v7 = vmul.f32 %v4956_v1, %v4956_v1  ;;  %v2995_v60 = vmul.f32 %v4948_v52, %v4948_v52  ;;  %v2996_v31 = vmul.f32 %v4952_v59, %v4952_v59  ;;  %v2998_v45 = vmul.f32 %v4972_v34, %v4972_v34 }
 0x1a2   : > { %v2859_v22 = vadd.f32 %v2858_v62, %v4950_v54  ;;  %v3119_v38 = vadd.f32 %v3118_v35, %v2992_v24  ;;  %v2997_v54 = vmul.f32 %v4966_v21, %v4966_v21  ;;  %s5359_s26 = sand.u32 1, %s3378_s21   ;;  %s3648_s5 = sshll.u32 %s4630_s18, 4 }
 0x1a3   : > { %s258_s6 = scalar_lea.vmem [#allocation5], %s4871_s12  ;;  %s264_s10 = scalar_lea.vmem [#allocation7], %s4871_s12 }
 0x1a4   : > { %v3120_v25 = vadd.f32 %v3119_v38, %v2993_v11  ;;  %v2860_v30 = vadd.f32 %v2859_v22, %v4956_v1  ;;  %s3216_s9 = sshll.u32 %s258_s6, 4  ;;  %s3230_s11 = sshll.u32 %s264_s10, 4  ;;  %s5371_s9 = int_to_ptr.vmem [resolvable:$true] %s3216_s9  ;;  %s5378_s11 = int_to_ptr.vmem [resolvable:$true] %s3230_s11 }
 0x1a5   : > { %s5369_s24 = scalar_lea.hbm %s5456_s3, %s3648_s5  ;;  %s5376_s29 = scalar_lea.hbm %s5457_s4, %s3648_s5 }
 0x1a6   : > { %v2861_v5 = vadd.f32 %v4948_v52, %v2860_v30  ;;  %v3121_v3 = vadd.f32 %v3120_v25, %v2994_v7  ;;  %v2999_v52 = vmul.f32 %v4964_v18, %v4964_v18  ;;  %v3002_v25 = vmul.f32 %v4988_v6, %v4988_v6  ;;  %s3182_s30 = scalar_lea.sflag [#allocation6], %s5359_s26  ;;  %s4528_s7 = scalar_lea.vmem %s5371_s9, 16 }
 0x1a7   : > { %p4529_p2 = scmp.ne.s32.totalorder %s5371_s9, %s4528_s7  ;;  %s4644_s8 = smov [#allocation5]  }
 0x1a8   : > { %v3122_v26 = vadd.f32 %v3121_v3, %v2995_v60  ;;  %v2862_v36 = vadd.f32 %v4952_v59, %v2861_v5  ;;  %v3000_v59 = vmul.f32 %v4968_v29, %v4968_v29  ;;  %s4532_s13 = sshll.u32 %s4644_s8, 4  ;;  %s4533_s13 = int_to_ptr.vmem [resolvable:$false] %s4532_s13 }
 0x1a9   : > { %p4530_p3 = pnand %p4529_p2, %p4713_p4  ;;  %s4534_s14 = scalar_lea.vmem %s4533_s13, 32 }
 0x1aa   : > { %v2863_v42 = vadd.f32 %v2862_v36, %v4966_v21  ;;  %v3123_v43 = vadd.f32 %v3122_v26, %v2996_v31  ;;  %v3001_v21 = vmul.f32 %v4982_v56, %v4982_v56  ;;  %v3006_v36 = vmul.f32 %v5004_v46, %v5004_v46  ;;  %p4535_p6 = scmp.lt.s32.totalorder %s5371_s9, %s4533_s13  ;;  %p4536_p7 = scmp.lt.s32.totalorder %s4534_s14, %s4528_s7 }
 0x1ab   : > { %p4531_p5 = pneg %p4530_p3 }
 0x1ac   : > { %v3124_v50 = vadd.f32 %v3123_v43, %v2997_v54  ;;  %v2864_v1 = vadd.f32 %v2863_v42, %v4972_v34  ;;  %p4537_p9 = por %p4536_p7, %p4535_p6 }
 0x1ae   : > { %v2865_v19 = vadd.f32 %v4964_v18, %v2864_v1  ;;  %v3125_v24 = vadd.f32 %v3124_v50, %v2998_v45  ;;  %v3003_v18 = vmul.f32 %v4980_v53, %v4980_v53  ;;  %p4538_p10 = pnand %p4537_p9, %p4531_p5 }
 0x1b0   : > { %v3126_v35 = vadd.f32 %v3125_v24, %v2999_v52  ;;  %v2866_v62 = vadd.f32 %v4968_v29, %v2865_v19  ;;  %v3004_v29 = vmul.f32 %v4984_v0, %v4984_v0  ;;  %v3010_v19 = vmul.f32 %v5020_v27, %v5020_v27 }
 0x1b2   : > { %v2867_v11 = vadd.f32 %v2866_v62, %v4982_v56  ;;  %v3127_v22 = vadd.f32 %v3126_v35, %v3000_v59  ;;  %v3005_v56 = vmul.f32 %v4998_v32, %v4998_v32 }
 0x1b4   : > { %v3128_v38 = vadd.f32 %v3127_v22, %v3001_v21  ;;  %v2868_v34 = vadd.f32 %v2867_v11, %v4988_v6 }
 0x1b6   : > { %v2869_v30 = vadd.f32 %v4980_v53, %v2868_v34  ;;  %v3129_v7 = vadd.f32 %v3128_v38, %v3002_v25  ;;  %v3007_v53 = vmul.f32 %v4996_v28, %v4996_v28  ;;  %v3014_v38 = vmul.f32 %v5036_v15, %v5036_v15 }
 0x1b8   : > { %v3130_v60 = vadd.f32 %v3129_v7, %v3003_v18  ;;  %v2870_v5 = vadd.f32 %v4984_v0, %v2869_v30  ;;  %v3008_v0 = vmul.f32 %v5000_v41, %v5000_v41 }
 0x1ba   : > { %v2871_v3 = vadd.f32 %v2870_v5, %v4998_v32  ;;  %v3131_v31 = vadd.f32 %v3130_v60, %v3004_v29  ;;  %v3009_v32 = vmul.f32 %v5014_v10, %v5014_v10 }
 0x1bc   : > { %v3132_v26 = vadd.f32 %v3131_v31, %v3005_v56  ;;  %v2872_v6 = vadd.f32 %v2871_v3, %v5004_v46 }
 0x1be   : > { %v2873_v54 = vadd.f32 %v4996_v28, %v2872_v6  ;;  %v3133_v42 = vadd.f32 %v3132_v26, %v3006_v36  ;;  %v3011_v28 = vmul.f32 %v5012_v8, %v5012_v8  ;;  %v5474_v6 = vld [vmem:[#allocation11_spill] sm:$0xff] }
 0x1c0   : > { %v3134_v43 = vadd.f32 %v3133_v42, %v3007_v53  ;;  %v2874_v50 = vadd.f32 %v5000_v41, %v2873_v54  ;;  %v3012_v41 = vmul.f32 %v5016_v17, %v5016_v17 }
 0x1c2   : > { %v2875_v1 = vadd.f32 %v2874_v50, %v5014_v10  ;;  %v3135_v45 = vadd.f32 %v3134_v43, %v3008_v0  ;;  %v3013_v10 = vmul.f32 %v5030_v58, %v5030_v58  ;;  %v3022_v50 = vmul.f32 %v5068_v20, %v5068_v20 }
 0x1c4   : > { %v3136_v52 = vadd.f32 %v3135_v45, %v3009_v32  ;;  %v2876_v46 = vadd.f32 %v2875_v1, %v5020_v27  ;;  %v3023_v32 = vmul.f32 %v5060_v48, %v5060_v48 }
 0x1c6   : > { %v2877_v24 = vadd.f32 %v5012_v8, %v2876_v46  ;;  %v3137_v59 = vadd.f32 %v3136_v52, %v3010_v19  ;;  %v3015_v8 = vmul.f32 %v5028_v55, %v5028_v55  ;;  %v5475_v52 = vld [vmem:[#allocation13_spill] sm:$0xff] }
 0x1c7   : > { %v3024_v46 = vmul.f32 %v5475_v52, %v5475_v52 }
 0x1c8   : > { %v3138_v35 = vadd.f32 %v3137_v59, %v3011_v28  ;;  %v2878_v62 = vadd.f32 %v5016_v17, %v2877_v24  ;;  %v3016_v17 = vmul.f32 %v5032_v9, %v5032_v9 }
 0x1ca   : > { %v2879_v21 = vadd.f32 %v2878_v62, %v5030_v58  ;;  %v3139_v11 = vadd.f32 %v3138_v35, %v3012_v41  ;;  %v3017_v58 = vmul.f32 %v5046_v51, %v5046_v51  ;;  %v3026_v35 = vmul.f32 %v5087_v2, %v5087_v2 }
 0x1cc   : > { %v3140_v22 = vadd.f32 %v3139_v11, %v3013_v10  ;;  %v2880_v27 = vadd.f32 %v2879_v21, %v5036_v15  ;;  %v5472_v15 = vld [vmem:[#allocation12_spill] sm:$0xff]  ;;  %v3028_v21 = vmul.f32 %v5083_v16, %v5083_v16 }
 0x1cd   : > { %v3018_v56 = vmul.f32 %v5472_v15, %v5472_v15 }
 0x1ce   : > { %v2881_v34 = vadd.f32 %v5028_v55, %v2880_v27  ;;  %v3141_v25 = vadd.f32 %v3140_v22, %v3014_v38  ;;  %v5473_v55 = vld [vmem:[#allocation10_spill] sm:$0xff] }
 0x1cf   : > { %v3019_v3 = vmul.f32 %v5473_v55, %v5473_v55 }
 0x1d0   : > { %v3142_v18 = vadd.f32 %v3141_v25, %v3015_v8  ;;  %v2882_v30 = vadd.f32 %v5032_v9, %v2881_v34  ;;  %v3020_v9 = vmul.f32 %v5474_v6, %v5474_v6  ;;  %v3030_v34 = vmul.f32 %v5113_v44, %v5113_v44 }
 0x1d2   : > { %v2883_v7 = vadd.f32 %v2882_v30, %v5046_v51  ;;  %v3143_v29 = vadd.f32 %v3142_v18, %v3016_v17  ;;  %v3021_v51 = vmul.f32 %v5062_v57, %v5062_v57 }
 0x1d4   : > { %v3144_v60 = vadd.f32 %v3143_v29, %v3017_v58  ;;  %v2884_v5 = vadd.f32 %v2883_v7, %v5472_v15 }
 0x1d6   : > { %v2885_v31 = vadd.f32 %v5473_v55, %v2884_v5  ;;  %v3145_v26 = vadd.f32 %v3144_v60, %v3018_v56  ;;  %v3034_v60 = vmul.f32 %v5139_v12, %v5139_v12 }
 0x1d8   : > { %v3146_v36 = vadd.f32 %v3145_v26, %v3019_v3  ;;  %v2886_v53 = vadd.f32 %v5474_v6, %v2885_v31  ;;  %v3039_v6 = vmul.f32 %v5156_v14, %v5156_v14 }
 0x1da   : > { %v2887_v54 = vadd.f32 %v2886_v53, %v5062_v57  ;;  %v3147_v42 = vadd.f32 %v3146_v36, %v3020_v9  ;;  %v3025_v57 = vmul.f32 %v5080_v61, %v5080_v61  ;;  %v3040_v36 = vmul.f32 %v5163_v47, %v5163_v47 }
 0x1dc   : > { %v3148_v0 = vadd.f32 %v3147_v42, %v3021_v51  ;;  %v2888_v43 = vadd.f32 %v2887_v54, %v5068_v20 }
 0x1de   : > { %v2889_v1 = vadd.f32 %v5060_v48, %v2888_v43  ;;  %v3149_v45 = vadd.f32 %v3148_v0, %v3022_v50  ;;  %v3027_v48 = vmul.f32 %v5078_v49, %v5078_v49 }
 0x1e0   : > { %v3150_v19 = vadd.f32 %v3149_v45, %v3023_v32  ;;  %v2890_v28 = vadd.f32 %v5475_v52, %v2889_v1 }
 0x1e2   : > { %v2891_v24 = vadd.f32 %v2890_v28, %v5080_v61  ;;  %v3151_v59 = vadd.f32 %v3150_v19, %v3024_v46  ;;  %v3029_v61 = vmul.f32 %v5106_v40, %v5106_v40 }
 0x1e4   : > { %v3152_v41 = vadd.f32 %v3151_v59, %v3025_v57  ;;  %v2892_v20 = vadd.f32 %v2891_v24, %v5087_v2 }
 0x1e6   : > { %v2893_v62 = vadd.f32 %v5078_v49, %v2892_v20  ;;  %v3153_v10 = vadd.f32 %v3152_v41, %v3026_v35  ;;  %v3031_v49 = vmul.f32 %v5104_v39, %v5104_v39 }
 0x1e8   : > { %v3154_v11 = vadd.f32 %v3153_v10, %v3027_v48  ;;  %v2894_v22 = vadd.f32 %v5083_v16, %v2893_v62  ;;  %v3032_v16 = vmul.f32 %v5109_v63, %v5109_v63 }
 0x1ea   : > { %v2895_v27 = vadd.f32 %v2894_v22, %v5106_v40  ;;  %v3155_v38 = vadd.f32 %v3154_v11, %v3028_v21  ;;  %v3033_v40 = vmul.f32 %v5132_v4, %v5132_v4 }
 0x1ec   : > { %v3156_v8 = vadd.f32 %v3155_v38, %v3029_v61  ;;  %v2896_v2 = vadd.f32 %v2895_v27, %v5113_v44 }
 0x1ee   : > { %v2897_v25 = vadd.f32 %v5104_v39, %v2896_v2  ;;  %v3157_v17 = vadd.f32 %v3156_v8, %v3030_v34  ;;  %v3035_v39 = vmul.f32 %v5130_v33, %v5130_v33 }
 0x1f0   : > { %v3158_v18 = vadd.f32 %v3157_v17, %v3031_v49  ;;  %v2898_v30 = vadd.f32 %v5109_v63, %v2897_v25  ;;  %v3036_v63 = vmul.f32 %v5135_v23, %v5135_v23 }
 0x1f2   : > { %v2899_v58 = vadd.f32 %v2898_v30, %v5132_v4  ;;  %v3159_v7 = vadd.f32 %v3158_v18, %v3032_v16  ;;  %v3037_v4 = vmul.f32 %v5160_v13, %v5160_v13 }
 0x1f4   : > { %v3160_v29 = vadd.f32 %v3159_v7, %v3033_v40  ;;  %v2900_v44 = vadd.f32 %v2899_v58, %v5139_v12 }
 0x1f6   : > { %v2901_v15 = vadd.f32 %v5130_v33, %v2900_v44  ;;  %v3161_v5 = vadd.f32 %v3160_v29, %v3034_v60  ;;  %v3038_v33 = vmul.f32 %v5167_v37, %v5167_v37 }
 0x1f8   : > { %v3162_v56 = vadd.f32 %v3161_v5, %v3035_v39  ;;  %v2902_v55 = vadd.f32 %v5135_v23, %v2901_v15 }
 0x1fa   : > { %v2903_v3 = vadd.f32 %v2902_v55, %v5160_v13  ;;  %v3163_v31 = vadd.f32 %v3162_v56, %v3036_v63 }
 0x1fc   : > { %v3164_v26 = vadd.f32 %v3163_v31, %v3037_v4  ;;  %v2904_v12 = vadd.f32 %v2903_v3, %v5167_v37 }
 0x1fe   : > { %v2905_v23 = vadd.f32 %v5156_v14, %v2904_v12  ;;  %v3165_v9 = vadd.f32 %v3164_v26, %v3038_v33 }
 0x200   : > { %v2906_v13 = vadd.f32 %v5163_v47, %v2905_v23  ;;  %v3166_v53 = vadd.f32 %v3165_v9, %v3039_v6 }
 0x202   : > { %v2907_v51 = vrot.slane %v2906_v13, 4  ;;  %v3167_v54 = vadd.f32 %v3166_v53, %v3040_v36 }
 0x204   : > { %v2908_v42 = vadd.f32 %v2907_v51, %v2906_v13  ;;  %v3168_v37 = vrot.slane %v3167_v54, 4 }
 0x206   : > { %v3169_v0 = vadd.f32 %v3168_v37, %v3167_v54  ;;  %v2909_v43 = vrot.slane %v2908_v42, 2 }
 0x208   : > { %v2910_v50 = vadd.f32 %v2909_v43, %v2908_v42  ;;  %v3170_v14 = vrot.slane %v3169_v0, 2 }
 0x20a   : > { %v2911_v47 = vrot.slane %v2910_v50, 1  ;;  %v3171_v32 = vadd.f32 %v3170_v14, %v3169_v0 }
 0x20c   : > { %v2912_v1 = vadd.f32 %v2911_v47, %v2910_v50  ;;  %v3172_v45 = vrot.slane %v3171_v32, 1 }
 0x20e   : > { %3174 = vst [vmem:[%s258_s6] sm:$0x1] %v2912_v1  ;;  %v3173_v52 = vadd.f32 %v3172_v45, %v3171_v32 }
 0x20f   : > { %4541 = shalt.err (!%p4538_p10)
}
 0x210   : > { %s4542_s5 = scalar_lea.hbm %s5369_s24, 16  ;;  %s4546_s21 = scalar_lea.hbm %s5456_s3, 32 }
 0x211   : > { %p4543_p11 = scmp.ne.s32.totalorder %s5369_s24, %s4542_s5  ;;  %p4547_p0 = scmp.lt.u32.totalorder %s5369_s24, %s5456_s3 }
 0x212   : > { %p4548_p1 = scmp.lt.u32.totalorder %s4546_s21, %s4542_s5  ;;  %p4550_p3 = scmp.lt.u32.totalorder %s4542_s5, %s5369_s24 }
 0x213   : > { %p4544_p12 = pnand %p4543_p11, %p4713_p4 }
 0x214   : > { %p4549_p2 = por %p4548_p1, %p4547_p0 }
 0x215   : > { %p4545_p13 = pneg %p4544_p12 }
 0x216   : > { %p4551_p5 = por %p4550_p3, %p4549_p2 }
 0x218   : > { %p4552_p6 = pnand %p4551_p5, %p4545_p13 }
 0x21a   : > { %4555 = shalt.err (!%p4552_p6)
}
 0x21b   : > { %4367 = dma.vmem_to_hbm [thread:$0]  (%p4713_p4), %s5371_s9, 16, %s5369_s24, %s3182_s30   ;;  %3175 = vst [vmem:[%s264_s10] sm:$0x1] %v3173_v52 }
 0x21c   : > { %s4556_s7 = scalar_lea.vmem %s5378_s11, 16  ;;  %s4645_s14 = smov [#allocation7]  }
 0x21d   : > { %p4557_p7 = scmp.ne.s32.totalorder %s5378_s11, %s4556_s7  ;;  %s4560_s5 = sshll.u32 %s4645_s14, 4  ;;  %s4561_s5 = int_to_ptr.vmem [resolvable:$false] %s4560_s5 }
 0x21e   : > { %s4562_s6 = scalar_lea.vmem %s4561_s5, 32  ;;  %p4563_p11 = scmp.lt.s32.totalorder %s5378_s11, %s4561_s5 }
 0x21f   : > { %p4558_p9 = pnand %p4557_p7, %p4713_p4  ;;  %p4564_p12 = scmp.lt.s32.totalorder %s4562_s6, %s4556_s7 }
 0x221   : > { %p4559_p10 = pneg %p4558_p9  ;;  %p4565_p13 = por %p4564_p12, %p4563_p11 }
 0x223   : > { %p4566_p0 = pnand %p4565_p13, %p4559_p10 }
 0x225   : > { %4569 = shalt.err (!%p4566_p0)
}
 0x226   : > { %s4570_s12 = scalar_lea.hbm %s5376_s29, 16  ;;  %s4574_s24 = scalar_lea.hbm %s5457_s4, 32 }
 0x227   : > { %p4571_p1 = scmp.ne.s32.totalorder %s5376_s29, %s4570_s12  ;;  %p4575_p5 = scmp.lt.u32.totalorder %s5376_s29, %s5457_s4 }
 0x228   : > { %p4576_p6 = scmp.lt.u32.totalorder %s4574_s24, %s4570_s12  ;;  %p4578_p9 = scmp.lt.u32.totalorder %s4570_s12, %s5376_s29 }
 0x229   : > { %p4572_p2 = pnand %p4571_p1, %p4713_p4 }
 0x22a   : > { %p4577_p7 = por %p4576_p6, %p4575_p5 }
 0x22b   : > { %p4573_p3 = pneg %p4572_p2 }
 0x22c   : > { %p4579_p10 = por %p4578_p9, %p4577_p7 }
 0x22e   : > { %p4580_p11 = pnand %p4579_p10, %p4573_p3 }
 0x230   : > { %4583 = shalt.err (!%p4580_p11)
}
 0x231   : > { %4368 = dma.vmem_to_hbm [thread:$0]  (%p4713_p4), %s5378_s11, 16, %s5376_s29, %s3182_s30  }
 0x232 PF: > { %p4382_p12 = scmp.ge.s32.totalorder %s4638_s20, 2  ;;  %s3242_s8 = sand.u32 1, %s4618_s15  }
 0x233   : > { %s3243_s13 = scalar_lea.sflag [#allocation4], %s3242_s8 }
 0x234   : > { %p4373_p13 = pnand %p4382_p12, %p4722_p8 }
 0x236   : > { %4609 = dma.done.wait (!%p4373_p13), %s3243_s13, 8192  }
 0x237   : > { %4611 = vsyncadd (!%p4373_p13), %s3243_s13, 4294959104  ;;  %s3251_s7 = sand.u32 1, %s3379_s22  }
 0x238   : > { %s3252_s25 = scalar_lea.sflag [#allocation6], %s3251_s7 }
 0x239   : > { %4613 = dma.done.wait (!%p4373_p13), %s3252_s25, 32  }
 0x23a   : > { %4615 = vsyncadd (!%p4373_p13), %s3252_s25, 4294967264  ;;  %s21_s20 = sadd.s32 1, %s4638_s20   ;;  %s5476_s15 = smov %s4622_s16 }
 0x23b   : > { %p18_p4 = scmp.ge.s32.totalorder %s21_s20, 4   ;;  %s5477_s16 = smov %s4626_s17 }
 0x23c   : > { %s5478_s17 = smov %s4728_s28  ;;  %s5479_s18 = smov %s4634_s19 }
 0x23d   : > { %s5480_s19 = smov %s5482_s23  ;;  %20 = sbr.rel (!%p18_p4) target bundleno = 6 (0x6), region = 106 }
 0x244   :  { %3264 = vsyncpa [#allocation4], 1 }
 0x245   :  { %3266 = vsyncpa [#allocation4 + $0x1], 1 }
 0x246   :  { %3267 = vsyncpa [#allocation6], 1 }
 0x247   :  { %3269 = vsyncpa [#allocation6 + $0x1], 1 }

</bundles_post_ra>
